<compile_context>
chip_gen: v7x
topology: tpu7x:2x2x1
jax: 0.10.0
libtpu: 0.0.40
codegen_flags: <defaults>
</compile_context>

<pallas_src>
import functools

import numpy as np
import jax
import jax.numpy as jnp
from jax import lax
from jax.experimental import pallas as pl
from jax.experimental.pallas import tpu as pltpu


_DEFAULT_HPARAMS = {"p1": 1.0, "p2": 1.0, "p3": 1.0, "p4": 1.0}


# ---------------------------------------------------------------------------
# Fused kernel: Sobel(A/B/F) + |gF - max(gA,gB)| + the plain L1 terms,
# reduced to per-block partial sums.
# ---------------------------------------------------------------------------

def _fused_loss_kernel(a_ref, at_ref, ab_ref,
                       b_ref, bt_ref, bb_ref,
                       f_ref, ft_ref, fb_ref,
                       ar_ref, br_ref,
                       o_ref, *, img_h):
    """One (R, W) row block of the fused SwinFusion loss partial sums.

    a/b/f       : (R, W) source-A / source-B / fused row blocks (flattened N*H rows)
    *t_ref/*b_ref: (8, W) aligned blocks whose last / first row is the row just
                  above / below the current block (garbage at image edges,
                  zeroed in-kernel by the image-boundary masks)
    ar/br       : (R, W) reconstruction row blocks
    o           : (1, 1, 8, 128) partial sums:
                  row 0: sum |sobel(F) - max(sobel(A), sobel(B))|
                  row 1: sum |F - max(A, B)|
                  row 2: sum |A - Ar|        row 3: sum |B - Br|
    """
    R, W = a_ref.shape
    t = pl.program_id(1)

    # ---- row-position-in-image masks (conv2d padding=1 => zero vertical halo
    # at every image top / bottom row) -------------------------------------
    rowi = lax.broadcasted_iota(jnp.int32, (R, 1), 0)
    row0 = rowi == 0
    rowL = rowi == R - 1
    if R <= img_h:
        # Block is a row slab of ONE image; its first row is image row t*R.
        row_in_img = rowi + t * R
        is_top = row_in_img == 0
        is_bot = row_in_img == img_h - 1
    else:
        # Block holds R // img_h whole images stacked along rows; boundaries
        # are at static positions (short unrolled OR, nb is capped small).
        is_top = row0
        is_bot = rowi == img_h - 1
        for k in range(1, R // img_h):
            is_top = is_top | (rowi == k * img_h)
            is_bot = is_bot | (rowi == k * img_h + img_h - 1)

    # ---- lane-edge masks for the zero padding of the horizontal taps ------
    lane = lax.broadcasted_iota(jnp.int32, (1, W), 1)
    lane0 = lane == 0
    laneL = lane == W - 1

    def hconv(v):
        # v[:, j-1] / v[:, j+1] with zero padding via lane rotations (XLU).
        left = jnp.where(lane0, 0.0, pltpu.roll(v, shift=1, axis=1))
        right = jnp.where(laneL, 0.0, pltpu.roll(v, shift=W - 1, axis=1))
        d = right - left                 # horizontal [-1, 0, 1]
        s = left + v + v + right         # horizontal [ 1, 2, 1]
        return d, s

    def sobel_abs(x_ref_, top_ref_, bot_ref_):
        x = x_ref_[...].astype(jnp.float32)                       # (R, W)
        d, s = hconv(x)
        d_th, s_th = hconv(top_ref_[...].astype(jnp.float32))     # (8, W)
        d_bh, s_bh = hconv(bot_ref_[...].astype(jnp.float32))
        d_t, s_t = d_th[7:8, :], s_th[7:8, :]                     # halo row above
        d_b, s_b = d_bh[0:1, :], s_bh[0:1, :]                     # halo row below
        # Vertical neighbours via aligned sublane rotations; patch the block
        # edge rows with the halo row and zero at image top / bottom rows.
        d_up = jnp.where(is_top, 0.0,
                         jnp.where(row0, d_t, pltpu.roll(d, shift=1, axis=0)))
        s_up = jnp.where(is_top, 0.0,
                         jnp.where(row0, s_t, pltpu.roll(s, shift=1, axis=0)))
        d_dn = jnp.where(is_bot, 0.0,
                         jnp.where(rowL, d_b, pltpu.roll(d, shift=R - 1, axis=0)))
        s_dn = jnp.where(is_bot, 0.0,
                         jnp.where(rowL, s_b, pltpu.roll(s, shift=R - 1, axis=0)))
        gx = d_up + d + d + d_dn         # vertical [1, 2, 1] on d
        gy = s_up - s_dn                 # vertical [1, 0, -1] on s
        return jnp.abs(gx) + jnp.abs(gy)

    # Plain-intensity terms first (keeps their inputs' live ranges short).
    a = a_ref[...].astype(jnp.float32)
    b = b_ref[...].astype(jnp.float32)
    f = f_ref[...].astype(jnp.float32)
    inten_sum = jnp.sum(jnp.abs(f - jnp.maximum(a, b)))
    a_sum = jnp.sum(jnp.abs(a - ar_ref[...].astype(jnp.float32)))
    b_sum = jnp.sum(jnp.abs(b - br_ref[...].astype(jnp.float32)))

    g_joint = jnp.maximum(sobel_abs(a_ref, at_ref, ab_ref),
                          sobel_abs(b_ref, bt_ref, bb_ref))
    grad_sum = jnp.sum(jnp.abs(sobel_abs(f_ref, ft_ref, fb_ref) - g_joint))

    orow = lax.broadcasted_iota(jnp.int32, (8, 128), 0)
    o_ref[0, 0] = (jnp.where(orow == 0, grad_sum, 0.0)
                   + jnp.where(orow == 1, inten_sum, 0.0)
                   + jnp.where(orow == 2, a_sum, 0.0)
                   + jnp.where(orow == 3, b_sum, 0.0))


# ---------------------------------------------------------------------------
# Blocking heuristics + pallas_call wrapper.
# ---------------------------------------------------------------------------

def _pick_block_rows(N, H, W, itemsize, target_bytes):
    bytes_per_row = max(1, itemsize * W)
    target_rows = max(8, int(target_bytes) // bytes_per_row)
    if target_rows < H:
        # Row-slab tiling inside each image: largest multiple-of-8 divisor of
        # H within budget; falls back to 8 (always fits VMEM), never to H.
        best = 8
        for cand in range(8, H + 1, 8):
            if H % cand == 0 and cand <= target_rows:
                best = cand
        return best
    # Whole images per block: batch a few images per grid step, but keep >= 2
    # grid steps when N >= 2 (v7x megacore has two TensorCores) and cap the
    # batching so the in-kernel boundary mask stays a short unrolled OR.
    max_nb = min(N, max(1, target_rows // H), 16)
    if N >= 2:
        max_nb = min(max_nb, N // 2)
    nb = 1
    for cand in range(1, max_nb + 1):
        if N % cand == 0:
            nb = cand
    return nb * H


def swinfusion_loss_terms(image_A, image_B, image_fused, image_Ar, image_Br,
                          *, block_rows=None,
                          target_block_bytes=3 * 2**19,        # 1.5 MiB / stream block
                          vmem_limit_bytes=48 * 1024 * 1024):  # safe on v5e/v6e/v7x
    """Fused Pallas computation of the mean-abs terms of loss_SwinFusion_split.

    Returns (l1_grad, l1_intensity, l1_A_Ar, l1_B_Br):
      l1_grad      = mean |sobelxy(F) - max(sobelxy(A), sobelxy(B))|
      l1_intensity = mean |F - max(A, B)|
      l1_A_Ar      = mean |A - Ar|,   l1_B_Br = mean |B - Br|
    """
    shapes = {tuple(a.shape) for a in (image_A, image_B, image_fused, image_Ar, image_Br)}
    assert len(shapes) == 1, "all five images must share a shape"
    N, C, H, W = image_A.shape
    assert C == 1, "Sobelxy weights are (1, 1, 3, 3); inputs must be single-channel"
    assert H % 8 == 0, "image height must be a multiple of 8 (sublane tiling)"

    def flat(x):
        x = x if jnp.issubdtype(x.dtype, jnp.floating) else x.astype(jnp.float32)
        return x.reshape(N * H, W)

    A, B, F, Ar, Br = map(flat, (image_A, image_B, image_fused, image_Ar, image_Br))
    itemsize = max(x.dtype.itemsize for x in (A, B, F, Ar, Br))

    R = block_rows if block_rows is not None else _pick_block_rows(
        N, H, W, itemsize, target_block_bytes)
    if R <= H:
        assert R % 8 == 0 and H % R == 0, "block_rows must be a multiple of 8 dividing H"
        G1, G2 = N, H // R
    else:
        assert R % H == 0 and (N * H) % R == 0, \
            "block_rows must be a multiple of H dividing N*H"
        G1, G2 = (N * H) // R, 1

    rb = R // 8                  # block height in 8-row units
    total_rb = (N * H) // 8

    def main_map(n, t):
        return (n * G2 + t, 0)

    def top_map(n, t):
        return (jnp.maximum((n * G2 + t) * rb - 1, 0), 0)

    def bot_map(n, t):
        return (jnp.minimum((n * G2 + t + 1) * rb, total_rb - 1), 0)

    main_spec = pl.BlockSpec((R, W), main_map)
    top_spec = pl.BlockSpec((8, W), top_map)
    bot_spec = pl.BlockSpec((8, W), bot_map)
    in_specs = [main_spec, top_spec, bot_spec] * 3 + [main_spec, main_spec]

    bytes_accessed = sum(int(x.size) * x.dtype.itemsize for x in (A, B, F, Ar, Br))
    out = pl.pallas_call(
        functools.partial(_fused_loss_kernel, img_h=H),
        out_shape=jax.ShapeDtypeStruct((G1, G2, 8, 128), jnp.float32),
        grid=(G1, G2),
        in_specs=in_specs,
        out_specs=pl.BlockSpec((1, 1, 8, 128), lambda n, t: (n, t, 0, 0)),
        compiler_params=pltpu.CompilerParams(
            dimension_semantics=("parallel", "parallel"),
            vmem_limit_bytes=vmem_limit_bytes,
        ),
        cost_estimate=pl.CostEstimate(
            flops=60 * N * H * W,
            transcendentals=0,
            bytes_accessed=bytes_accessed + 4 * G1 * G2 * 8 * 128,
        ),
    )(A, A, A, B, B, B, F, F, F, Ar, Br)

    totals = out.sum(axis=(0, 1))[:, 0]          # rows 0..3 hold the four sums
    denom = jnp.float32(N * C * H * W)
    return (totals[0] / denom, totals[1] / denom,
            totals[2] / denom, totals[3] / denom)


# ---------------------------------------------------------------------------
# loss_SwinFusion_split.forward
# ---------------------------------------------------------------------------

def loss_swinfusion_split(image_A, image_B, image_fused, image_Ar, image_Br,
                          hparams=_DEFAULT_HPARAMS, **kw):
    l1_grad, l1_inten, l1_a, l1_b = swinfusion_loss_terms(
        image_A, image_B, image_fused, image_Ar, image_Br, **kw)
    loss_l1 = hparams["p1"] * l1_inten
    loss_gradient = hparams["p2"] * l1_grad
    loss_int = hparams["p4"] * (l1_a + l1_b)
    # TODO(synk): hparams['p3'] * (1 - L_SSIM(...)) needs the external ssim()
    # function, which is not part of the provided module; the SSIM term (and the
    # corresponding 5th return value) is omitted rather than faked.
    fusion_loss = loss_l1 + loss_gradient + loss_int
    return fusion_loss, loss_gradient, loss_l1, loss_int


# ---------------------------------------------------------------------------
# Pure-JAX reference (F.conv2d semantics: cross-correlation, zero padding=1).
# ---------------------------------------------------------------------------

def _reference_loss_terms(A, B, F, Ar, Br):
    wx = jnp.asarray([[-1., 0., 1.], [-2., 0., 2.], [-1., 0., 1.]], jnp.float32)
    wy = jnp.asarray([[1., 2., 1.], [0., 0., 0.], [-1., -2., -1.]], jnp.float32)

    def sobel(x):
        dn = lax.conv_dimension_numbers(x.shape, (1, 1, 3, 3), ("NCHW", "OIHW", "NCHW"))
        sx = lax.conv_general_dilated(x, wx[None, None], (1, 1), ((1, 1), (1, 1)),
                                      dimension_numbers=dn,
                                      precision=lax.Precision.HIGHEST)
        sy = lax.conv_general_dilated(x, wy[None, None], (1, 1), ((1, 1), (1, 1)),
                                      dimension_numbers=dn,
                                      precision=lax.Precision.HIGHEST)
        return jnp.abs(sx) + jnp.abs(sy)

    l1 = lambda x, y: jnp.mean(jnp.abs(x - y))
    return (l1(sobel(F), jnp.maximum(sobel(A), sobel(B))),
            l1(F, jnp.maximum(A, B)),
            l1(A, Ar),
            l1(B, Br))


if __name__ == "__main__":
    key = jax.random.PRNGKey(0)

    def make_inputs(k, shape):
        return [jax.random.uniform(kk, shape, dtype=jnp.float32)
                for kk in jax.random.split(k, 5)]

    k1, k2, _ = jax.random.split(key, 3)

    # 1) Module-scale demo: N=2, C=1, 16x128, default blocking
    #    (one whole image per grid step -> grid (2, 1)).
    imgs = make_inputs(k1, (2, 1, 16, 128))
    got = jax.block_until_ready(swinfusion_loss_terms(*imgs))
    want = _reference_loss_terms(*imgs)
    for g, w in zip(got, want):
        np.testing.assert_allclose(np.asarray(g), np.asarray(w), rtol=1e-4, atol=1e-6)

    # 2) Row-slab tiling inside an image (exercises the halo-row path and the
    #    per-block image-row offset): H=32 images cut into 8-row blocks.
    imgs2 = make_inputs(k2, (2, 1, 32, 128))
    got2 = jax.block_until_ready(swinfusion_loss_terms(*imgs2, block_rows=8))
    want2 = _reference_loss_terms(*imgs2)
    for g, w in zip(got2, want2):
        np.testing.assert_allclose(np.asarray(g), np.asarray(w), rtol=1e-4, atol=1e-6)

    # 3) Multi-image blocks (two whole images per grid step; exercises the
    #    interior image-boundary zeroing of the vertical taps).
    got3 = jax.block_until_ready(swinfusion_loss_terms(*imgs, block_rows=32))
    for g, w in zip(got3, want):
        np.testing.assert_allclose(np.asarray(g), np.asarray(w), rtol=1e-4, atol=1e-6)

    # 4) Full loss forward (SSIM term omitted, see TODO in loss_swinfusion_split).
    losses = jax.block_until_ready(loss_swinfusion_split(*imgs))

    print("KERNEL_OK")
</pallas_src>

<mosaic_0001>
module attributes {stable_mosaic.version = 11 : i64} {
  func.func @_fused_loss_kernel(%arg0: i32, %arg1: i32, %arg2: memref<16x128xf32, #tpu.memory_space<vmem>>, %arg3: memref<8x128xf32, #tpu.memory_space<vmem>>, %arg4: memref<8x128xf32, #tpu.memory_space<vmem>>, %arg5: memref<16x128xf32, #tpu.memory_space<vmem>>, %arg6: memref<8x128xf32, #tpu.memory_space<vmem>>, %arg7: memref<8x128xf32, #tpu.memory_space<vmem>>, %arg8: memref<16x128xf32, #tpu.memory_space<vmem>>, %arg9: memref<8x128xf32, #tpu.memory_space<vmem>>, %arg10: memref<8x128xf32, #tpu.memory_space<vmem>>, %arg11: memref<16x128xf32, #tpu.memory_space<vmem>>, %arg12: memref<16x128xf32, #tpu.memory_space<vmem>>, %arg13: memref<1x1x8x128xf32, #tpu.memory_space<vmem>>) attributes {dimension_semantics = [#tpu.dimension_semantics<parallel>, #tpu.dimension_semantics<parallel>], iteration_bounds = array<i64: 2, 1>, scalar_prefetch = 0 : i64, scratch_operands = 0 : i64, tpu.core_type = #tpu.core_type<tc>, window_params = [{transform_indices = @transform_0, window_bounds = array<i64: 16, 128>}, {transform_indices = @transform_1, window_bounds = array<i64: 8, 128>}, {transform_indices = @transform_2, window_bounds = array<i64: 8, 128>}, {transform_indices = @transform_3, window_bounds = array<i64: 16, 128>}, {transform_indices = @transform_4, window_bounds = array<i64: 8, 128>}, {transform_indices = @transform_5, window_bounds = array<i64: 8, 128>}, {transform_indices = @transform_6, window_bounds = array<i64: 16, 128>}, {transform_indices = @transform_7, window_bounds = array<i64: 8, 128>}, {transform_indices = @transform_8, window_bounds = array<i64: 8, 128>}, {transform_indices = @transform_9, window_bounds = array<i64: 16, 128>}, {transform_indices = @transform_10, window_bounds = array<i64: 16, 128>}, {transform_indices = @transform_11, window_bounds = array<i64: 1, 1, 8, 128>}]} {
    %0 = tpu.iota {dimensions = array<i32: 0>} : vector<16x1xi32>
    %c0_i32 = arith.constant 0 : i32
    %1 = vector.broadcast %c0_i32 : i32 to vector<16x1xi32>
    %2 = arith.cmpi eq, %0, %1 : vector<16x1xi32>
    %c15_i32 = arith.constant 15 : i32
    %3 = vector.broadcast %c15_i32 : i32 to vector<16x1xi32>
    %4 = arith.cmpi eq, %0, %3 : vector<16x1xi32>
    %c16_i32 = arith.constant 16 : i32
    %5 = arith.muli %arg1, %c16_i32 : i32
    %6 = vector.broadcast %5 : i32 to vector<16x1xi32>
    %7 = arith.addi %0, %6 : vector<16x1xi32>
    %c0_i32_0 = arith.constant 0 : i32
    %8 = vector.broadcast %c0_i32_0 : i32 to vector<16x1xi32>
    %9 = arith.cmpi eq, %7, %8 : vector<16x1xi32>
    %c15_i32_1 = arith.constant 15 : i32
    %10 = vector.broadcast %c15_i32_1 : i32 to vector<16x1xi32>
    %11 = arith.cmpi eq, %7, %10 : vector<16x1xi32>
    %12 = tpu.iota {dimensions = array<i32: 1>} : vector<1x128xi32>
    %c0_i32_2 = arith.constant 0 : i32
    %13 = vector.broadcast %c0_i32_2 : i32 to vector<1x128xi32>
    %14 = arith.cmpi eq, %12, %13 : vector<1x128xi32>
    %c127_i32 = arith.constant 127 : i32
    %15 = vector.broadcast %c127_i32 : i32 to vector<1x128xi32>
    %16 = arith.cmpi eq, %12, %15 : vector<1x128xi32>
    %c0 = arith.constant 0 : index
    %c0_3 = arith.constant 0 : index
    %17 = vector.load %arg2[%c0, %c0_3] : memref<16x128xf32, #tpu.memory_space<vmem>>, vector<16x128xf32>
    %c0_4 = arith.constant 0 : index
    %c0_5 = arith.constant 0 : index
    %18 = vector.load %arg5[%c0_4, %c0_5] : memref<16x128xf32, #tpu.memory_space<vmem>>, vector<16x128xf32>
    %c0_6 = arith.constant 0 : index
    %c0_7 = arith.constant 0 : index
    %19 = vector.load %arg8[%c0_6, %c0_7] : memref<16x128xf32, #tpu.memory_space<vmem>>, vector<16x128xf32>
    %20 = arith.maximumf %17, %18 : vector<16x128xf32>
    %21 = arith.subf %19, %20 : vector<16x128xf32>
    %22 = math.absf %21 : vector<16x128xf32>
    %23 = vector.shape_cast %22 : vector<16x128xf32> to vector<1x16x128xf32>
    %cst = arith.constant dense<0.000000e+00> : vector<1xf32>
    %24 = vector.multi_reduction <add>, %23, %cst [1, 2] : vector<1x16x128xf32> to vector<1xf32>
    %25 = vector.shape_cast %24 : vector<1xf32> to vector<1x1x1xf32>
    %26 = vector.extract %25[0, 0, 0] : f32 from vector<1x1x1xf32>
    %c0_8 = arith.constant 0 : index
    %c0_9 = arith.constant 0 : index
    %27 = vector.load %arg11[%c0_8, %c0_9] : memref<16x128xf32, #tpu.memory_space<vmem>>, vector<16x128xf32>
    %28 = arith.subf %17, %27 : vector<16x128xf32>
    %29 = math.absf %28 : vector<16x128xf32>
    %30 = vector.shape_cast %29 : vector<16x128xf32> to vector<1x16x128xf32>
    %cst_10 = arith.constant dense<0.000000e+00> : vector<1xf32>
    %31 = vector.multi_reduction <add>, %30, %cst_10 [1, 2] : vector<1x16x128xf32> to vector<1xf32>
    %32 = vector.shape_cast %31 : vector<1xf32> to vector<1x1x1xf32>
    %33 = vector.extract %32[0, 0, 0] : f32 from vector<1x1x1xf32>
    %c0_11 = arith.constant 0 : index
    %c0_12 = arith.constant 0 : index
    %34 = vector.load %arg12[%c0_11, %c0_12] : memref<16x128xf32, #tpu.memory_space<vmem>>, vector<16x128xf32>
    %35 = arith.subf %18, %34 : vector<16x128xf32>
    %36 = math.absf %35 : vector<16x128xf32>
    %37 = vector.shape_cast %36 : vector<16x128xf32> to vector<1x16x128xf32>
    %cst_13 = arith.constant dense<0.000000e+00> : vector<1xf32>
    %38 = vector.multi_reduction <add>, %37, %cst_13 [1, 2] : vector<1x16x128xf32> to vector<1xf32>
    %39 = vector.shape_cast %38 : vector<1xf32> to vector<1x1x1xf32>
    %40 = vector.extract %39[0, 0, 0] : f32 from vector<1x1x1xf32>
    %c0_14 = arith.constant 0 : index
    %c0_15 = arith.constant 0 : index
    %41 = vector.load %arg2[%c0_14, %c0_15] : memref<16x128xf32, #tpu.memory_space<vmem>>, vector<16x128xf32>
    %c1_i32 = arith.constant 1 : i32
    %42 = tpu.dynamic_rotate %41 by %c1_i32 dim 1 : vector<16x128xf32>, i32 -> vector<16x128xf32>
    %cst_16 = arith.constant 0.000000e+00 : f32
    %43 = vector.shape_cast %14 : vector<1x128xi1> to vector<1x128xi1>
    %44 = vector.broadcast %43 : vector<1x128xi1> to vector<16x128xi1>
    %45 = vector.broadcast %cst_16 : f32 to vector<16x128xf32>
    %46 = arith.select %44, %45, %42 : vector<16x128xi1>, vector<16x128xf32>
    %c127_i32_17 = arith.constant 127 : i32
    %47 = tpu.dynamic_rotate %41 by %c127_i32_17 dim 1 : vector<16x128xf32>, i32 -> vector<16x128xf32>
    %cst_18 = arith.constant 0.000000e+00 : f32
    %48 = vector.shape_cast %16 : vector<1x128xi1> to vector<1x128xi1>
    %49 = vector.broadcast %48 : vector<1x128xi1> to vector<16x128xi1>
    %50 = vector.broadcast %cst_18 : f32 to vector<16x128xf32>
    %51 = arith.select %49, %50, %47 : vector<16x128xi1>, vector<16x128xf32>
    %52 = arith.subf %51, %46 : vector<16x128xf32>
    %53 = arith.addf %46, %41 : vector<16x128xf32>
    %54 = arith.addf %53, %41 : vector<16x128xf32>
    %55 = arith.addf %54, %51 : vector<16x128xf32>
    %c0_19 = arith.constant 0 : index
    %c0_20 = arith.constant 0 : index
    %56 = vector.load %arg3[%c0_19, %c0_20] : memref<8x128xf32, #tpu.memory_space<vmem>>, vector<8x128xf32>
    %c1_i32_21 = arith.constant 1 : i32
    %57 = tpu.dynamic_rotate %56 by %c1_i32_21 dim 1 : vector<8x128xf32>, i32 -> vector<8x128xf32>
    %cst_22 = arith.constant 0.000000e+00 : f32
    %58 = vector.shape_cast %14 : vector<1x128xi1> to vector<1x128xi1>
    %59 = vector.broadcast %58 : vector<1x128xi1> to vector<8x128xi1>
    %60 = vector.broadcast %cst_22 : f32 to vector<8x128xf32>
    %61 = arith.select %59, %60, %57 : vector<8x128xi1>, vector<8x128xf32>
    %c127_i32_23 = arith.constant 127 : i32
    %62 = tpu.dynamic_rotate %56 by %c127_i32_23 dim 1 : vector<8x128xf32>, i32 -> vector<8x128xf32>
    %cst_24 = arith.constant 0.000000e+00 : f32
    %63 = vector.shape_cast %16 : vector<1x128xi1> to vector<1x128xi1>
    %64 = vector.broadcast %63 : vector<1x128xi1> to vector<8x128xi1>
    %65 = vector.broadcast %cst_24 : f32 to vector<8x128xf32>
    %66 = arith.select %64, %65, %62 : vector<8x128xi1>, vector<8x128xf32>
    %67 = arith.subf %66, %61 : vector<8x128xf32>
    %68 = arith.addf %61, %56 : vector<8x128xf32>
    %69 = arith.addf %68, %56 : vector<8x128xf32>
    %70 = arith.addf %69, %66 : vector<8x128xf32>
    %c0_25 = arith.constant 0 : index
    %c0_26 = arith.constant 0 : index
    %71 = vector.load %arg4[%c0_25, %c0_26] : memref<8x128xf32, #tpu.memory_space<vmem>>, vector<8x128xf32>
    %c1_i32_27 = arith.constant 1 : i32
    %72 = tpu.dynamic_rotate %71 by %c1_i32_27 dim 1 : vector<8x128xf32>, i32 -> vector<8x128xf32>
    %cst_28 = arith.constant 0.000000e+00 : f32
    %73 = vector.shape_cast %14 : vector<1x128xi1> to vector<1x128xi1>
    %74 = vector.broadcast %73 : vector<1x128xi1> to vector<8x128xi1>
    %75 = vector.broadcast %cst_28 : f32 to vector<8x128xf32>
    %76 = arith.select %74, %75, %72 : vector<8x128xi1>, vector<8x128xf32>
    %c127_i32_29 = arith.constant 127 : i32
    %77 = tpu.dynamic_rotate %71 by %c127_i32_29 dim 1 : vector<8x128xf32>, i32 -> vector<8x128xf32>
    %cst_30 = arith.constant 0.000000e+00 : f32
    %78 = vector.shape_cast %16 : vector<1x128xi1> to vector<1x128xi1>
    %79 = vector.broadcast %78 : vector<1x128xi1> to vector<8x128xi1>
    %80 = vector.broadcast %cst_30 : f32 to vector<8x128xf32>
    %81 = arith.select %79, %80, %77 : vector<8x128xi1>, vector<8x128xf32>
    %82 = arith.subf %81, %76 : vector<8x128xf32>
    %83 = arith.addf %76, %71 : vector<8x128xf32>
    %84 = arith.addf %83, %71 : vector<8x128xf32>
    %85 = arith.addf %84, %81 : vector<8x128xf32>
    %86 = vector.extract_strided_slice %67 {offsets = [7, 0], sizes = [1, 128], strides = [1, 1]} : vector<8x128xf32> to vector<1x128xf32>
    %87 = vector.extract_strided_slice %70 {offsets = [7, 0], sizes = [1, 128], strides = [1, 1]} : vector<8x128xf32> to vector<1x128xf32>
    %88 = vector.extract_strided_slice %82 {offsets = [0, 0], sizes = [1, 128], strides = [1, 1]} : vector<8x128xf32> to vector<1x128xf32>
    %89 = vector.extract_strided_slice %85 {offsets = [0, 0], sizes = [1, 128], strides = [1, 1]} : vector<8x128xf32> to vector<1x128xf32>
    %c1_i32_31 = arith.constant 1 : i32
    %90 = tpu.dynamic_rotate %52 by %c1_i32_31 dim 0 : vector<16x128xf32>, i32 -> vector<16x128xf32>
    %91 = vector.shape_cast %2 : vector<16x1xi1> to vector<16x1xi1>
    %92 = vector.broadcast %91 : vector<16x1xi1> to vector<16x128xi1>
    %93 = vector.shape_cast %86 : vector<1x128xf32> to vector<1x128xf32>
    %94 = vector.broadcast %93 : vector<1x128xf32> to vector<16x128xf32>
    %95 = arith.select %92, %94, %90 : vector<16x128xi1>, vector<16x128xf32>
    %cst_32 = arith.constant 0.000000e+00 : f32
    %96 = vector.shape_cast %9 : vector<16x1xi1> to vector<16x1xi1>
    %97 = vector.broadcast %96 : vector<16x1xi1> to vector<16x128xi1>
    %98 = vector.broadcast %cst_32 : f32 to vector<16x128xf32>
    %99 = arith.select %97, %98, %95 : vector<16x128xi1>, vector<16x128xf32>
    %c1_i32_33 = arith.constant 1 : i32
    %100 = tpu.dynamic_rotate %55 by %c1_i32_33 dim 0 : vector<16x128xf32>, i32 -> vector<16x128xf32>
    %101 = vector.shape_cast %2 : vector<16x1xi1> to vector<16x1xi1>
    %102 = vector.broadcast %101 : vector<16x1xi1> to vector<16x128xi1>
    %103 = vector.shape_cast %87 : vector<1x128xf32> to vector<1x128xf32>
    %104 = vector.broadcast %103 : vector<1x128xf32> to vector<16x128xf32>
    %105 = arith.select %102, %104, %100 : vector<16x128xi1>, vector<16x128xf32>
    %cst_34 = arith.constant 0.000000e+00 : f32
    %106 = vector.shape_cast %9 : vector<16x1xi1> to vector<16x1xi1>
    %107 = vector.broadcast %106 : vector<16x1xi1> to vector<16x128xi1>
    %108 = vector.broadcast %cst_34 : f32 to vector<16x128xf32>
    %109 = arith.select %107, %108, %105 : vector<16x128xi1>, vector<16x128xf32>
    %c15_i32_35 = arith.constant 15 : i32
    %110 = tpu.dynamic_rotate %52 by %c15_i32_35 dim 0 : vector<16x128xf32>, i32 -> vector<16x128xf32>
    %111 = vector.shape_cast %4 : vector<16x1xi1> to vector<16x1xi1>
    %112 = vector.broadcast %111 : vector<16x1xi1> to vector<16x128xi1>
    %113 = vector.shape_cast %88 : vector<1x128xf32> to vector<1x128xf32>
    %114 = vector.broadcast %113 : vector<1x128xf32> to vector<16x128xf32>
    %115 = arith.select %112, %114, %110 : vector<16x128xi1>, vector<16x128xf32>
    %cst_36 = arith.constant 0.000000e+00 : f32
    %116 = vector.shape_cast %11 : vector<16x1xi1> to vector<16x1xi1>
    %117 = vector.broadcast %116 : vector<16x1xi1> to vector<16x128xi1>
    %118 = vector.broadcast %cst_36 : f32 to vector<16x128xf32>
    %119 = arith.select %117, %118, %115 : vector<16x128xi1>, vector<16x128xf32>
    %c15_i32_37 = arith.constant 15 : i32
    %120 = tpu.dynamic_rotate %55 by %c15_i32_37 dim 0 : vector<16x128xf32>, i32 -> vector<16x128xf32>
    %121 = vector.shape_cast %4 : vector<16x1xi1> to vector<16x1xi1>
    %122 = vector.broadcast %121 : vector<16x1xi1> to vector<16x128xi1>
    %123 = vector.shape_cast %89 : vector<1x128xf32> to vector<1x128xf32>
    %124 = vector.broadcast %123 : vector<1x128xf32> to vector<16x128xf32>
    %125 = arith.select %122, %124, %120 : vector<16x128xi1>, vector<16x128xf32>
    %cst_38 = arith.constant 0.000000e+00 : f32
    %126 = vector.shape_cast %11 : vector<16x1xi1> to vector<16x1xi1>
    %127 = vector.broadcast %126 : vector<16x1xi1> to vector<16x128xi1>
    %128 = vector.broadcast %cst_38 : f32 to vector<16x128xf32>
    %129 = arith.select %127, %128, %125 : vector<16x128xi1>, vector<16x128xf32>
    %130 = arith.addf %99, %52 : vector<16x128xf32>
    %131 = arith.addf %130, %52 : vector<16x128xf32>
    %132 = arith.addf %131, %119 : vector<16x128xf32>
    %133 = arith.subf %109, %129 : vector<16x128xf32>
    %134 = math.absf %132 : vector<16x128xf32>
    %135 = math.absf %133 : vector<16x128xf32>
    %136 = arith.addf %134, %135 : vector<16x128xf32>
    %c0_39 = arith.constant 0 : index
    %c0_40 = arith.constant 0 : index
    %137 = vector.load %arg5[%c0_39, %c0_40] : memref<16x128xf32, #tpu.memory_space<vmem>>, vector<16x128xf32>
    %c1_i32_41 = arith.constant 1 : i32
    %138 = tpu.dynamic_rotate %137 by %c1_i32_41 dim 1 : vector<16x128xf32>, i32 -> vector<16x128xf32>
    %cst_42 = arith.constant 0.000000e+00 : f32
    %139 = vector.shape_cast %14 : vector<1x128xi1> to vector<1x128xi1>
    %140 = vector.broadcast %139 : vector<1x128xi1> to vector<16x128xi1>
    %141 = vector.broadcast %cst_42 : f32 to vector<16x128xf32>
    %142 = arith.select %140, %141, %138 : vector<16x128xi1>, vector<16x128xf32>
    %c127_i32_43 = arith.constant 127 : i32
    %143 = tpu.dynamic_rotate %137 by %c127_i32_43 dim 1 : vector<16x128xf32>, i32 -> vector<16x128xf32>
    %cst_44 = arith.constant 0.000000e+00 : f32
    %144 = vector.shape_cast %16 : vector<1x128xi1> to vector<1x128xi1>
    %145 = vector.broadcast %144 : vector<1x128xi1> to vector<16x128xi1>
    %146 = vector.broadcast %cst_44 : f32 to vector<16x128xf32>
    %147 = arith.select %145, %146, %143 : vector<16x128xi1>, vector<16x128xf32>
    %148 = arith.subf %147, %142 : vector<16x128xf32>
    %149 = arith.addf %142, %137 : vector<16x128xf32>
    %150 = arith.addf %149, %137 : vector<16x128xf32>
    %151 = arith.addf %150, %147 : vector<16x128xf32>
    %c0_45 = arith.constant 0 : index
    %c0_46 = arith.constant 0 : index
    %152 = vector.load %arg6[%c0_45, %c0_46] : memref<8x128xf32, #tpu.memory_space<vmem>>, vector<8x128xf32>
    %c1_i32_47 = arith.constant 1 : i32
    %153 = tpu.dynamic_rotate %152 by %c1_i32_47 dim 1 : vector<8x128xf32>, i32 -> vector<8x128xf32>
    %cst_48 = arith.constant 0.000000e+00 : f32
    %154 = vector.shape_cast %14 : vector<1x128xi1> to vector<1x128xi1>
    %155 = vector.broadcast %154 : vector<1x128xi1> to vector<8x128xi1>
    %156 = vector.broadcast %cst_48 : f32 to vector<8x128xf32>
    %157 = arith.select %155, %156, %153 : vector<8x128xi1>, vector<8x128xf32>
    %c127_i32_49 = arith.constant 127 : i32
    %158 = tpu.dynamic_rotate %152 by %c127_i32_49 dim 1 : vector<8x128xf32>, i32 -> vector<8x128xf32>
    %cst_50 = arith.constant 0.000000e+00 : f32
    %159 = vector.shape_cast %16 : vector<1x128xi1> to vector<1x128xi1>
    %160 = vector.broadcast %159 : vector<1x128xi1> to vector<8x128xi1>
    %161 = vector.broadcast %cst_50 : f32 to vector<8x128xf32>
    %162 = arith.select %160, %161, %158 : vector<8x128xi1>, vector<8x128xf32>
    %163 = arith.subf %162, %157 : vector<8x128xf32>
    %164 = arith.addf %157, %152 : vector<8x128xf32>
    %165 = arith.addf %164, %152 : vector<8x128xf32>
    %166 = arith.addf %165, %162 : vector<8x128xf32>
    %c0_51 = arith.constant 0 : index
    %c0_52 = arith.constant 0 : index
    %167 = vector.load %arg7[%c0_51, %c0_52] : memref<8x128xf32, #tpu.memory_space<vmem>>, vector<8x128xf32>
    %c1_i32_53 = arith.constant 1 : i32
    %168 = tpu.dynamic_rotate %167 by %c1_i32_53 dim 1 : vector<8x128xf32>, i32 -> vector<8x128xf32>
    %cst_54 = arith.constant 0.000000e+00 : f32
    %169 = vector.shape_cast %14 : vector<1x128xi1> to vector<1x128xi1>
    %170 = vector.broadcast %169 : vector<1x128xi1> to vector<8x128xi1>
    %171 = vector.broadcast %cst_54 : f32 to vector<8x128xf32>
    %172 = arith.select %170, %171, %168 : vector<8x128xi1>, vector<8x128xf32>
    %c127_i32_55 = arith.constant 127 : i32
    %173 = tpu.dynamic_rotate %167 by %c127_i32_55 dim 1 : vector<8x128xf32>, i32 -> vector<8x128xf32>
    %cst_56 = arith.constant 0.000000e+00 : f32
    %174 = vector.shape_cast %16 : vector<1x128xi1> to vector<1x128xi1>
    %175 = vector.broadcast %174 : vector<1x128xi1> to vector<8x128xi1>
    %176 = vector.broadcast %cst_56 : f32 to vector<8x128xf32>
    %177 = arith.select %175, %176, %173 : vector<8x128xi1>, vector<8x128xf32>
    %178 = arith.subf %177, %172 : vector<8x128xf32>
    %179 = arith.addf %172, %167 : vector<8x128xf32>
    %180 = arith.addf %179, %167 : vector<8x128xf32>
    %181 = arith.addf %180, %177 : vector<8x128xf32>
    %182 = vector.extract_strided_slice %163 {offsets = [7, 0], sizes = [1, 128], strides = [1, 1]} : vector<8x128xf32> to vector<1x128xf32>
    %183 = vector.extract_strided_slice %166 {offsets = [7, 0], sizes = [1, 128], strides = [1, 1]} : vector<8x128xf32> to vector<1x128xf32>
    %184 = vector.extract_strided_slice %178 {offsets = [0, 0], sizes = [1, 128], strides = [1, 1]} : vector<8x128xf32> to vector<1x128xf32>
    %185 = vector.extract_strided_slice %181 {offsets = [0, 0], sizes = [1, 128], strides = [1, 1]} : vector<8x128xf32> to vector<1x128xf32>
    %c1_i32_57 = arith.constant 1 : i32
    %186 = tpu.dynamic_rotate %148 by %c1_i32_57 dim 0 : vector<16x128xf32>, i32 -> vector<16x128xf32>
    %187 = vector.shape_cast %2 : vector<16x1xi1> to vector<16x1xi1>
    %188 = vector.broadcast %187 : vector<16x1xi1> to vector<16x128xi1>
    %189 = vector.shape_cast %182 : vector<1x128xf32> to vector<1x128xf32>
    %190 = vector.broadcast %189 : vector<1x128xf32> to vector<16x128xf32>
    %191 = arith.select %188, %190, %186 : vector<16x128xi1>, vector<16x128xf32>
    %cst_58 = arith.constant 0.000000e+00 : f32
    %192 = vector.shape_cast %9 : vector<16x1xi1> to vector<16x1xi1>
    %193 = vector.broadcast %192 : vector<16x1xi1> to vector<16x128xi1>
    %194 = vector.broadcast %cst_58 : f32 to vector<16x128xf32>
    %195 = arith.select %193, %194, %191 : vector<16x128xi1>, vector<16x128xf32>
    %c1_i32_59 = arith.constant 1 : i32
    %196 = tpu.dynamic_rotate %151 by %c1_i32_59 dim 0 : vector<16x128xf32>, i32 -> vector<16x128xf32>
    %197 = vector.shape_cast %2 : vector<16x1xi1> to vector<16x1xi1>
    %198 = vector.broadcast %197 : vector<16x1xi1> to vector<16x128xi1>
    %199 = vector.shape_cast %183 : vector<1x128xf32> to vector<1x128xf32>
    %200 = vector.broadcast %199 : vector<1x128xf32> to vector<16x128xf32>
    %201 = arith.select %198, %200, %196 : vector<16x128xi1>, vector<16x128xf32>
    %cst_60 = arith.constant 0.000000e+00 : f32
    %202 = vector.shape_cast %9 : vector<16x1xi1> to vector<16x1xi1>
    %203 = vector.broadcast %202 : vector<16x1xi1> to vector<16x128xi1>
    %204 = vector.broadcast %cst_60 : f32 to vector<16x128xf32>
    %205 = arith.select %203, %204, %201 : vector<16x128xi1>, vector<16x128xf32>
    %c15_i32_61 = arith.constant 15 : i32
    %206 = tpu.dynamic_rotate %148 by %c15_i32_61 dim 0 : vector<16x128xf32>, i32 -> vector<16x128xf32>
    %207 = vector.shape_cast %4 : vector<16x1xi1> to vector<16x1xi1>
    %208 = vector.broadcast %207 : vector<16x1xi1> to vector<16x128xi1>
    %209 = vector.shape_cast %184 : vector<1x128xf32> to vector<1x128xf32>
    %210 = vector.broadcast %209 : vector<1x128xf32> to vector<16x128xf32>
    %211 = arith.select %208, %210, %206 : vector<16x128xi1>, vector<16x128xf32>
    %cst_62 = arith.constant 0.000000e+00 : f32
    %212 = vector.shape_cast %11 : vector<16x1xi1> to vector<16x1xi1>
    %213 = vector.broadcast %212 : vector<16x1xi1> to vector<16x128xi1>
    %214 = vector.broadcast %cst_62 : f32 to vector<16x128xf32>
    %215 = arith.select %213, %214, %211 : vector<16x128xi1>, vector<16x128xf32>
    %c15_i32_63 = arith.constant 15 : i32
    %216 = tpu.dynamic_rotate %151 by %c15_i32_63 dim 0 : vector<16x128xf32>, i32 -> vector<16x128xf32>
    %217 = vector.shape_cast %4 : vector<16x1xi1> to vector<16x1xi1>
    %218 = vector.broadcast %217 : vector<16x1xi1> to vector<16x128xi1>
    %219 = vector.shape_cast %185 : vector<1x128xf32> to vector<1x128xf32>
    %220 = vector.broadcast %219 : vector<1x128xf32> to vector<16x128xf32>
    %221 = arith.select %218, %220, %216 : vector<16x128xi1>, vector<16x128xf32>
    %cst_64 = arith.constant 0.000000e+00 : f32
    %222 = vector.shape_cast %11 : vector<16x1xi1> to vector<16x1xi1>
    %223 = vector.broadcast %222 : vector<16x1xi1> to vector<16x128xi1>
    %224 = vector.broadcast %cst_64 : f32 to vector<16x128xf32>
    %225 = arith.select %223, %224, %221 : vector<16x128xi1>, vector<16x128xf32>
    %226 = arith.addf %195, %148 : vector<16x128xf32>
    %227 = arith.addf %226, %148 : vector<16x128xf32>
    %228 = arith.addf %227, %215 : vector<16x128xf32>
    %229 = arith.subf %205, %225 : vector<16x128xf32>
    %230 = math.absf %228 : vector<16x128xf32>
    %231 = math.absf %229 : vector<16x128xf32>
    %232 = arith.addf %230, %231 : vector<16x128xf32>
    %233 = arith.maximumf %136, %232 : vector<16x128xf32>
    %c0_65 = arith.constant 0 : index
    %c0_66 = arith.constant 0 : index
    %234 = vector.load %arg8[%c0_65, %c0_66] : memref<16x128xf32, #tpu.memory_space<vmem>>, vector<16x128xf32>
    %c1_i32_67 = arith.constant 1 : i32
    %235 = tpu.dynamic_rotate %234 by %c1_i32_67 dim 1 : vector<16x128xf32>, i32 -> vector<16x128xf32>
    %cst_68 = arith.constant 0.000000e+00 : f32
    %236 = vector.shape_cast %14 : vector<1x128xi1> to vector<1x128xi1>
    %237 = vector.broadcast %236 : vector<1x128xi1> to vector<16x128xi1>
    %238 = vector.broadcast %cst_68 : f32 to vector<16x128xf32>
    %239 = arith.select %237, %238, %235 : vector<16x128xi1>, vector<16x128xf32>
    %c127_i32_69 = arith.constant 127 : i32
    %240 = tpu.dynamic_rotate %234 by %c127_i32_69 dim 1 : vector<16x128xf32>, i32 -> vector<16x128xf32>
    %cst_70 = arith.constant 0.000000e+00 : f32
    %241 = vector.shape_cast %16 : vector<1x128xi1> to vector<1x128xi1>
    %242 = vector.broadcast %241 : vector<1x128xi1> to vector<16x128xi1>
    %243 = vector.broadcast %cst_70 : f32 to vector<16x128xf32>
    %244 = arith.select %242, %243, %240 : vector<16x128xi1>, vector<16x128xf32>
    %245 = arith.subf %244, %239 : vector<16x128xf32>
    %246 = arith.addf %239, %234 : vector<16x128xf32>
    %247 = arith.addf %246, %234 : vector<16x128xf32>
    %248 = arith.addf %247, %244 : vector<16x128xf32>
    %c0_71 = arith.constant 0 : index
    %c0_72 = arith.constant 0 : index
    %249 = vector.load %arg9[%c0_71, %c0_72] : memref<8x128xf32, #tpu.memory_space<vmem>>, vector<8x128xf32>
    %c1_i32_73 = arith.constant 1 : i32
    %250 = tpu.dynamic_rotate %249 by %c1_i32_73 dim 1 : vector<8x128xf32>, i32 -> vector<8x128xf32>
    %cst_74 = arith.constant 0.000000e+00 : f32
    %251 = vector.shape_cast %14 : vector<1x128xi1> to vector<1x128xi1>
    %252 = vector.broadcast %251 : vector<1x128xi1> to vector<8x128xi1>
    %253 = vector.broadcast %cst_74 : f32 to vector<8x128xf32>
    %254 = arith.select %252, %253, %250 : vector<8x128xi1>, vector<8x128xf32>
    %c127_i32_75 = arith.constant 127 : i32
    %255 = tpu.dynamic_rotate %249 by %c127_i32_75 dim 1 : vector<8x128xf32>, i32 -> vector<8x128xf32>
    %cst_76 = arith.constant 0.000000e+00 : f32
    %256 = vector.shape_cast %16 : vector<1x128xi1> to vector<1x128xi1>
    %257 = vector.broadcast %256 : vector<1x128xi1> to vector<8x128xi1>
    %258 = vector.broadcast %cst_76 : f32 to vector<8x128xf32>
    %259 = arith.select %257, %258, %255 : vector<8x128xi1>, vector<8x128xf32>
    %260 = arith.subf %259, %254 : vector<8x128xf32>
    %261 = arith.addf %254, %249 : vector<8x128xf32>
    %262 = arith.addf %261, %249 : vector<8x128xf32>
    %263 = arith.addf %262, %259 : vector<8x128xf32>
    %c0_77 = arith.constant 0 : index
    %c0_78 = arith.constant 0 : index
    %264 = vector.load %arg10[%c0_77, %c0_78] : memref<8x128xf32, #tpu.memory_space<vmem>>, vector<8x128xf32>
    %c1_i32_79 = arith.constant 1 : i32
    %265 = tpu.dynamic_rotate %264 by %c1_i32_79 dim 1 : vector<8x128xf32>, i32 -> vector<8x128xf32>
    %cst_80 = arith.constant 0.000000e+00 : f32
    %266 = vector.shape_cast %14 : vector<1x128xi1> to vector<1x128xi1>
    %267 = vector.broadcast %266 : vector<1x128xi1> to vector<8x128xi1>
    %268 = vector.broadcast %cst_80 : f32 to vector<8x128xf32>
    %269 = arith.select %267, %268, %265 : vector<8x128xi1>, vector<8x128xf32>
    %c127_i32_81 = arith.constant 127 : i32
    %270 = tpu.dynamic_rotate %264 by %c127_i32_81 dim 1 : vector<8x128xf32>, i32 -> vector<8x128xf32>
    %cst_82 = arith.constant 0.000000e+00 : f32
    %271 = vector.shape_cast %16 : vector<1x128xi1> to vector<1x128xi1>
    %272 = vector.broadcast %271 : vector<1x128xi1> to vector<8x128xi1>
    %273 = vector.broadcast %cst_82 : f32 to vector<8x128xf32>
    %274 = arith.select %272, %273, %270 : vector<8x128xi1>, vector<8x128xf32>
    %275 = arith.subf %274, %269 : vector<8x128xf32>
    %276 = arith.addf %269, %264 : vector<8x128xf32>
    %277 = arith.addf %276, %264 : vector<8x128xf32>
    %278 = arith.addf %277, %274 : vector<8x128xf32>
    %279 = vector.extract_strided_slice %260 {offsets = [7, 0], sizes = [1, 128], strides = [1, 1]} : vector<8x128xf32> to vector<1x128xf32>
    %280 = vector.extract_strided_slice %263 {offsets = [7, 0], sizes = [1, 128], strides = [1, 1]} : vector<8x128xf32> to vector<1x128xf32>
    %281 = vector.extract_strided_slice %275 {offsets = [0, 0], sizes = [1, 128], strides = [1, 1]} : vector<8x128xf32> to vector<1x128xf32>
    %282 = vector.extract_strided_slice %278 {offsets = [0, 0], sizes = [1, 128], strides = [1, 1]} : vector<8x128xf32> to vector<1x128xf32>
    %c1_i32_83 = arith.constant 1 : i32
    %283 = tpu.dynamic_rotate %245 by %c1_i32_83 dim 0 : vector<16x128xf32>, i32 -> vector<16x128xf32>
    %284 = vector.shape_cast %2 : vector<16x1xi1> to vector<16x1xi1>
    %285 = vector.broadcast %284 : vector<16x1xi1> to vector<16x128xi1>
    %286 = vector.shape_cast %279 : vector<1x128xf32> to vector<1x128xf32>
    %287 = vector.broadcast %286 : vector<1x128xf32> to vector<16x128xf32>
    %288 = arith.select %285, %287, %283 : vector<16x128xi1>, vector<16x128xf32>
    %cst_84 = arith.constant 0.000000e+00 : f32
    %289 = vector.shape_cast %9 : vector<16x1xi1> to vector<16x1xi1>
    %290 = vector.broadcast %289 : vector<16x1xi1> to vector<16x128xi1>
    %291 = vector.broadcast %cst_84 : f32 to vector<16x128xf32>
    %292 = arith.select %290, %291, %288 : vector<16x128xi1>, vector<16x128xf32>
    %c1_i32_85 = arith.constant 1 : i32
    %293 = tpu.dynamic_rotate %248 by %c1_i32_85 dim 0 : vector<16x128xf32>, i32 -> vector<16x128xf32>
    %294 = vector.shape_cast %2 : vector<16x1xi1> to vector<16x1xi1>
    %295 = vector.broadcast %294 : vector<16x1xi1> to vector<16x128xi1>
    %296 = vector.shape_cast %280 : vector<1x128xf32> to vector<1x128xf32>
    %297 = vector.broadcast %296 : vector<1x128xf32> to vector<16x128xf32>
    %298 = arith.select %295, %297, %293 : vector<16x128xi1>, vector<16x128xf32>
    %cst_86 = arith.constant 0.000000e+00 : f32
    %299 = vector.shape_cast %9 : vector<16x1xi1> to vector<16x1xi1>
    %300 = vector.broadcast %299 : vector<16x1xi1> to vector<16x128xi1>
    %301 = vector.broadcast %cst_86 : f32 to vector<16x128xf32>
    %302 = arith.select %300, %301, %298 : vector<16x128xi1>, vector<16x128xf32>
    %c15_i32_87 = arith.constant 15 : i32
    %303 = tpu.dynamic_rotate %245 by %c15_i32_87 dim 0 : vector<16x128xf32>, i32 -> vector<16x128xf32>
    %304 = vector.shape_cast %4 : vector<16x1xi1> to vector<16x1xi1>
    %305 = vector.broadcast %304 : vector<16x1xi1> to vector<16x128xi1>
    %306 = vector.shape_cast %281 : vector<1x128xf32> to vector<1x128xf32>
    %307 = vector.broadcast %306 : vector<1x128xf32> to vector<16x128xf32>
    %308 = arith.select %305, %307, %303 : vector<16x128xi1>, vector<16x128xf32>
    %cst_88 = arith.constant 0.000000e+00 : f32
    %309 = vector.shape_cast %11 : vector<16x1xi1> to vector<16x1xi1>
    %310 = vector.broadcast %309 : vector<16x1xi1> to vector<16x128xi1>
    %311 = vector.broadcast %cst_88 : f32 to vector<16x128xf32>
    %312 = arith.select %310, %311, %308 : vector<16x128xi1>, vector<16x128xf32>
    %c15_i32_89 = arith.constant 15 : i32
    %313 = tpu.dynamic_rotate %248 by %c15_i32_89 dim 0 : vector<16x128xf32>, i32 -> vector<16x128xf32>
    %314 = vector.shape_cast %4 : vector<16x1xi1> to vector<16x1xi1>
    %315 = vector.broadcast %314 : vector<16x1xi1> to vector<16x128xi1>
    %316 = vector.shape_cast %282 : vector<1x128xf32> to vector<1x128xf32>
    %317 = vector.broadcast %316 : vector<1x128xf32> to vector<16x128xf32>
    %318 = arith.select %315, %317, %313 : vector<16x128xi1>, vector<16x128xf32>
    %cst_90 = arith.constant 0.000000e+00 : f32
    %319 = vector.shape_cast %11 : vector<16x1xi1> to vector<16x1xi1>
    %320 = vector.broadcast %319 : vector<16x1xi1> to vector<16x128xi1>
    %321 = vector.broadcast %cst_90 : f32 to vector<16x128xf32>
    %322 = arith.select %320, %321, %318 : vector<16x128xi1>, vector<16x128xf32>
    %323 = arith.addf %292, %245 : vector<16x128xf32>
    %324 = arith.addf %323, %245 : vector<16x128xf32>
    %325 = arith.addf %324, %312 : vector<16x128xf32>
    %326 = arith.subf %302, %322 : vector<16x128xf32>
    %327 = math.absf %325 : vector<16x128xf32>
    %328 = math.absf %326 : vector<16x128xf32>
    %329 = arith.addf %327, %328 : vector<16x128xf32>
    %330 = arith.subf %329, %233 : vector<16x128xf32>
    %331 = math.absf %330 : vector<16x128xf32>
    %332 = vector.shape_cast %331 : vector<16x128xf32> to vector<1x16x128xf32>
    %cst_91 = arith.constant dense<0.000000e+00> : vector<1xf32>
    %333 = vector.multi_reduction <add>, %332, %cst_91 [1, 2] : vector<1x16x128xf32> to vector<1xf32>
    %334 = vector.shape_cast %333 : vector<1xf32> to vector<1x1x1xf32>
    %335 = vector.extract %334[0, 0, 0] : f32 from vector<1x1x1xf32>
    %336 = tpu.iota {dimensions = array<i32: 0>} : vector<8x128xi32>
    %c0_i32_92 = arith.constant 0 : i32
    %337 = vector.broadcast %c0_i32_92 : i32 to vector<8x128xi32>
    %338 = arith.cmpi eq, %336, %337 : vector<8x128xi32>
    %cst_93 = arith.constant 0.000000e+00 : f32
    %339 = vector.broadcast %335 : f32 to vector<8x128xf32>
    %340 = vector.broadcast %cst_93 : f32 to vector<8x128xf32>
    %341 = arith.select %338, %339, %340 : vector<8x128xi1>, vector<8x128xf32>
    %c1_i32_94 = arith.constant 1 : i32
    %342 = vector.broadcast %c1_i32_94 : i32 to vector<8x128xi32>
    %343 = arith.cmpi eq, %336, %342 : vector<8x128xi32>
    %cst_95 = arith.constant 0.000000e+00 : f32
    %344 = vector.broadcast %26 : f32 to vector<8x128xf32>
    %345 = vector.broadcast %cst_95 : f32 to vector<8x128xf32>
    %346 = arith.select %343, %344, %345 : vector<8x128xi1>, vector<8x128xf32>
    %347 = arith.addf %341, %346 : vector<8x128xf32>
    %c2_i32 = arith.constant 2 : i32
    %348 = vector.broadcast %c2_i32 : i32 to vector<8x128xi32>
    %349 = arith.cmpi eq, %336, %348 : vector<8x128xi32>
    %cst_96 = arith.constant 0.000000e+00 : f32
    %350 = vector.broadcast %33 : f32 to vector<8x128xf32>
    %351 = vector.broadcast %cst_96 : f32 to vector<8x128xf32>
    %352 = arith.select %349, %350, %351 : vector<8x128xi1>, vector<8x128xf32>
    %353 = arith.addf %347, %352 : vector<8x128xf32>
    %c3_i32 = arith.constant 3 : i32
    %354 = vector.broadcast %c3_i32 : i32 to vector<8x128xi32>
    %355 = arith.cmpi eq, %336, %354 : vector<8x128xi32>
    %cst_97 = arith.constant 0.000000e+00 : f32
    %356 = vector.broadcast %40 : f32 to vector<8x128xf32>
    %357 = vector.broadcast %cst_97 : f32 to vector<8x128xf32>
    %358 = arith.select %355, %356, %357 : vector<8x128xi1>, vector<8x128xf32>
    %359 = arith.addf %353, %358 : vector<8x128xf32>
    %c0_98 = arith.constant 0 : index
    %c0_99 = arith.constant 0 : index
    %c0_100 = arith.constant 0 : index
    %c0_101 = arith.constant 0 : index
    %360 = vector.load %arg13[%c0_98, %c0_99, %c0_100, %c0_101] : memref<1x1x8x128xf32, #tpu.memory_space<vmem>>, vector<1x1x8x128xf32>
    %361 = vector.shape_cast %360 : vector<1x1x8x128xf32> to vector<8x128xf32>
    %362 = vector.shape_cast %359 : vector<8x128xf32> to vector<1x1x8x128xf32>
    tpu.vector_store %arg13[%c0_98, %c0_99, %c0_100, %c0_101], %362 {strides = array<i32>} : memref<1x1x8x128xf32, #tpu.memory_space<vmem>>, vector<1x1x8x128xf32>,
    return
  }
  func.func @transform_0(%arg0: i32, %arg1: i32) -> (i32, i32) {
    %c1_i32 = arith.constant 1 : i32
    %0 = arith.muli %arg0, %c1_i32 : i32
    %1 = arith.addi %0, %arg1 : i32
    %c0_i32 = arith.constant 0 : i32
    %c0_i32_0 = arith.constant 0 : i32
    return %1, %c0_i32 : i32, i32
  }
  func.func @transform_1(%arg0: i32, %arg1: i32) -> (i32, i32) {
    %c1_i32 = arith.constant 1 : i32
    %0 = arith.muli %arg0, %c1_i32 : i32
    %1 = arith.addi %0, %arg1 : i32
    %c2_i32 = arith.constant 2 : i32
    %2 = arith.muli %1, %c2_i32 : i32
    %c1_i32_0 = arith.constant 1 : i32
    %3 = arith.subi %2, %c1_i32_0 : i32
    %c0_i32 = arith.constant 0 : i32
    %4 = arith.maxsi %3, %c0_i32 : i32
    %c0_i32_1 = arith.constant 0 : i32
    %c0_i32_2 = arith.constant 0 : i32
    return %4, %c0_i32_1 : i32, i32
  }
  func.func @transform_2(%arg0: i32, %arg1: i32) -> (i32, i32) {
    %c1_i32 = arith.constant 1 : i32
    %0 = arith.muli %arg0, %c1_i32 : i32
    %1 = arith.addi %0, %arg1 : i32
    %c1_i32_0 = arith.constant 1 : i32
    %2 = arith.addi %1, %c1_i32_0 : i32
    %c2_i32 = arith.constant 2 : i32
    %3 = arith.muli %2, %c2_i32 : i32
    %c3_i32 = arith.constant 3 : i32
    %4 = arith.minsi %3, %c3_i32 : i32
    %c0_i32 = arith.constant 0 : i32
    %c0_i32_1 = arith.constant 0 : i32
    return %4, %c0_i32 : i32, i32
  }
  func.func @transform_3(%arg0: i32, %arg1: i32) -> (i32, i32) {
    %c1_i32 = arith.constant 1 : i32
    %0 = arith.muli %arg0, %c1_i32 : i32
    %1 = arith.addi %0, %arg1 : i32
    %c0_i32 = arith.constant 0 : i32
    %c0_i32_0 = arith.constant 0 : i32
    return %1, %c0_i32 : i32, i32
  }
  func.func @transform_4(%arg0: i32, %arg1: i32) -> (i32, i32) {
    %c1_i32 = arith.constant 1 : i32
    %0 = arith.muli %arg0, %c1_i32 : i32
    %1 = arith.addi %0, %arg1 : i32
    %c2_i32 = arith.constant 2 : i32
    %2 = arith.muli %1, %c2_i32 : i32
    %c1_i32_0 = arith.constant 1 : i32
    %3 = arith.subi %2, %c1_i32_0 : i32
    %c0_i32 = arith.constant 0 : i32
    %4 = arith.maxsi %3, %c0_i32 : i32
    %c0_i32_1 = arith.constant 0 : i32
    %c0_i32_2 = arith.constant 0 : i32
    return %4, %c0_i32_1 : i32, i32
  }
  func.func @transform_5(%arg0: i32, %arg1: i32) -> (i32, i32) {
    %c1_i32 = arith.constant 1 : i32
    %0 = arith.muli %arg0, %c1_i32 : i32
    %1 = arith.addi %0, %arg1 : i32
    %c1_i32_0 = arith.constant 1 : i32
    %2 = arith.addi %1, %c1_i32_0 : i32
    %c2_i32 = arith.constant 2 : i32
    %3 = arith.muli %2, %c2_i32 : i32
    %c3_i32 = arith.constant 3 : i32
    %4 = arith.minsi %3, %c3_i32 : i32
    %c0_i32 = arith.constant 0 : i32
    %c0_i32_1 = arith.constant 0 : i32
    return %4, %c0_i32 : i32, i32
  }
  func.func @transform_6(%arg0: i32, %arg1: i32) -> (i32, i32) {
    %c1_i32 = arith.constant 1 : i32
    %0 = arith.muli %arg0, %c1_i32 : i32
    %1 = arith.addi %0, %arg1 : i32
    %c0_i32 = arith.constant 0 : i32
    %c0_i32_0 = arith.constant 0 : i32
    return %1, %c0_i32 : i32, i32
  }
  func.func @transform_7(%arg0: i32, %arg1: i32) -> (i32, i32) {
    %c1_i32 = arith.constant 1 : i32
    %0 = arith.muli %arg0, %c1_i32 : i32
    %1 = arith.addi %0, %arg1 : i32
    %c2_i32 = arith.constant 2 : i32
    %2 = arith.muli %1, %c2_i32 : i32
    %c1_i32_0 = arith.constant 1 : i32
    %3 = arith.subi %2, %c1_i32_0 : i32
    %c0_i32 = arith.constant 0 : i32
    %4 = arith.maxsi %3, %c0_i32 : i32
    %c0_i32_1 = arith.constant 0 : i32
    %c0_i32_2 = arith.constant 0 : i32
    return %4, %c0_i32_1 : i32, i32
  }
  func.func @transform_8(%arg0: i32, %arg1: i32) -> (i32, i32) {
    %c1_i32 = arith.constant 1 : i32
    %0 = arith.muli %arg0, %c1_i32 : i32
    %1 = arith.addi %0, %arg1 : i32
    %c1_i32_0 = arith.constant 1 : i32
    %2 = arith.addi %1, %c1_i32_0 : i32
    %c2_i32 = arith.constant 2 : i32
    %3 = arith.muli %2, %c2_i32 : i32
    %c3_i32 = arith.constant 3 : i32
    %4 = arith.minsi %3, %c3_i32 : i32
    %c0_i32 = arith.constant 0 : i32
    %c0_i32_1 = arith.constant 0 : i32
    return %4, %c0_i32 : i32, i32
  }
  func.func @transform_9(%arg0: i32, %arg1: i32) -> (i32, i32) {
    %c1_i32 = arith.constant 1 : i32
    %0 = arith.muli %arg0, %c1_i32 : i32
    %1 = arith.addi %0, %arg1 : i32
    %c0_i32 = arith.constant 0 : i32
    %c0_i32_0 = arith.constant 0 : i32
    return %1, %c0_i32 : i32, i32
  }
  func.func @transform_10(%arg0: i32, %arg1: i32) -> (i32, i32) {
    %c1_i32 = arith.constant 1 : i32
    %0 = arith.muli %arg0, %c1_i32 : i32
    %1 = arith.addi %0, %arg1 : i32
    %c0_i32 = arith.constant 0 : i32
    %c0_i32_0 = arith.constant 0 : i32
    return %1, %c0_i32 : i32, i32
  }
  func.func @transform_11(%arg0: i32, %arg1: i32) -> (i32, i32, i32, i32) {
    %c0_i32 = arith.constant 0 : i32
    %c0_i32_0 = arith.constant 0 : i32
    %c0_i32_1 = arith.constant 0 : i32
    return %arg0, %arg1, %c0_i32, %c0_i32_0 : i32, i32, i32, i32
  }
}

</mosaic_0001>

<bundles_post_ra>
// kernel: tpu_custom_call.1
= control target key start
LH: loop header
LB: loop body
LE: loop exit
PB: predicated region body
PF: predicated region fallthrough
CT: control target
= control target key end

     0   :  { %s3556_s0 = inlined_call_operand.hbm [shape: f32[32,128], index: 0, kind: input, shape index: {}]   ;;  %s3557_s1 = inlined_call_operand.hbm [shape: f32[32,128], index: 1, kind: input, shape index: {}]   ;;  %s3558_s2 = inlined_call_operand.hbm [shape: f32[32,128], index: 2, kind: input, shape index: {}]   ;;  %s3559_s3 = inlined_call_operand.hbm [shape: f32[32,128], index: 3, kind: input, shape index: {}]   ;;  %s3560_s4 = inlined_call_operand.hbm [shape: f32[32,128], index: 4, kind: input, shape index: {}]   ;;  %s3561_s5 = inlined_call_operand.hbm [shape: f32[32,128], index: 5, kind: input, shape index: {}]   ;;  %s3562_s6 = inlined_call_operand.hbm [shape: f32[32,128], index: 6, kind: input, shape index: {}]   ;;  %s3563_s7 = inlined_call_operand.hbm [shape: f32[32,128], index: 7, kind: input, shape index: {}]   ;;  %s3564_s8 = inlined_call_operand.hbm [shape: f32[32,128], index: 8, kind: input, shape index: {}]   ;;  %s3565_s9 = inlined_call_operand.vmem [shape: f32[32,128], index: 9, kind: input, shape index: {}]   ;;  %s3566_s10 = inlined_call_operand.hbm [shape: f32[32,128], index: 10, kind: input, shape index: {}]   ;;  %s3567_s11 = inlined_call_operand.hbm [shape: f32[2,1,8,128], index: 11, kind: output, shape index: {}]  }
   0x1   :  { %3626 = sst [smem:[#allocation51_spill]] %s3556_s0 }
   0x2   :  { %3627 = sst [smem:[#allocation52_spill]] %s3557_s1 }
   0x3   :  { %3628 = sst [smem:[#allocation53_spill]] %s3558_s2 }
   0x4   :  { %3629 = sst [smem:[#allocation54_spill]] %s3559_s3 }
   0x5   :  { %3630 = sst [smem:[#allocation55_spill]] %s3560_s4 }
   0x6   :  { %3631 = sst [smem:[#allocation56_spill]] %s3561_s5 }
   0x7   :  { %3632 = sst [smem:[#allocation57_spill]] %s3562_s6 }
   0x8   :  { %3633 = sst [smem:[#allocation58_spill]] %s3563_s7 }
   0x9   :  { %3634 = sst [smem:[#allocation59_spill]] %s3564_s8 }
   0xa   :  { %3635 = sst [smem:[#allocation60_spill]] %s3565_s9 }
   0xb   :  { %3636 = sst [smem:[#allocation61_spill]] %s3566_s10 }
   0xc   :  { %3637 = sst [smem:[#allocation62_spill]] %s3567_s11 }
   0xd   :  { %16 = vsyncpa [#allocation3], 0 }
   0xe   :  { %18 = vsyncpa [#allocation3 + $0x1], 0 }
   0xf   :  { %19 = vsyncpa [#allocation6], 0 }
  0x10   :  { %21 = vsyncpa [#allocation6 + $0x1], 0 }
  0x11   :  { %22 = vsyncpa [#allocation9], 0 }
  0x12   :  { %24 = vsyncpa [#allocation9 + $0x1], 0 }
  0x13   :  { %25 = vsyncpa [#allocation12], 0 }
  0x14   :  { %27 = vsyncpa [#allocation12 + $0x1], 0 }
  0x15   :  { %28 = vsyncpa [#allocation15], 0 }
  0x16   :  { %30 = vsyncpa [#allocation15 + $0x1], 0 }
  0x17   :  { %31 = vsyncpa [#allocation18], 0 }
  0x18   :  { %33 = vsyncpa [#allocation18 + $0x1], 0 }
  0x19   :  { %34 = vsyncpa [#allocation4], 0 }
  0x1a   :  { %36 = vsyncpa [#allocation4 + $0x1], 0  ;;  %s2466_s17 = smov 0   ;;  %s2468_s18 = smov 0  }
  0x1b   :  { %s2470_s19 = smov 0   ;;  %s2472_s20 = smov 0  }
  0x1c   :  { %s2474_s21 = smov 0   ;;  %s2476_s22 = smov 0  }
  0x1d   :  { %s2478_s23 = smov 0   ;;  %s2480_s24 = smov 0  }
  0x1e   :  { %s2482_s25 = smov 0   ;;  %s2484_s26 = smov 0  }
  0x1f   :  { %s2486_s27 = smov 0   ;;  %s2488_s28 = smov 0  }
  0x20 LB: > { %3638 = sst [smem:[#allocation31_spill]] %s2353_s19  ;;  %s2527_s29 = sadd.s32 4294967295, %s2389_s28   ;;  %s2389_s28 = sphi %s2488_s28, %s42_s28   ;;  %s2385_s27 = sphi %s2486_s27, %s3754_s27   ;;  %s2381_s26 = sphi %s2484_s26, %s3748_s26   ;;  %s2377_s25 = sphi %s2482_s25, %s3747_s25   ;;  %s2373_s24 = sphi %s2480_s24, %s3746_s24   ;;  %s2369_s23 = sphi %s2478_s23, %s3753_s23   ;;  %s2365_s22 = sphi %s2476_s22, %s3744_s22   ;;  %s2361_s21 = sphi %s2474_s21, %s3743_s21   ;;  %s2357_s20 = sphi %s2472_s20, %s3742_s20   ;;  %s2353_s19 = sphi %s2470_s19, %s3752_s19   ;;  %s2349_s18 = sphi %s2468_s18, %s3751_s18   ;;  %s2345_s17 = sphi %s2466_s17, %s3750_s17  }
  0x21   : > { %3639 = sst [smem:[#allocation32_spill]] %s2361_s21  ;;  %s54_s12 = sadd.s32 1, %s2385_s27 }
  0x22   : > { %3640 = sst [smem:[#allocation33_spill]] %s2365_s22  ;;  %s63_s13 = sadd.s32 1, %s2377_s25 }
  0x23   : > { %3641 = sst [smem:[#allocation34_spill]] %s2369_s23  ;;  %p56_p0 = scmp.ge.s32.totalorder %s54_s12, 2 }
  0x24   : > { %3642 = sst [smem:[#allocation35_spill]] %s2373_s24  ;;  %p70_p1 = scmp.ne.s32.totalorder %s2377_s25, %s2373_s24 }
  0x25   : > { %3643 = sst [smem:[#allocation36_spill]] %s2377_s25  ;;  %p3573_p2 = scmp.eq.s32.totalorder %s2389_s28, 0 }
  0x26   : > { %3644 = sst [smem:[#allocation37_spill]] %s2381_s26  ;;  %p76_p3 = scmp.ne.s32.totalorder %s2373_s24, %s2369_s23 }
  0x27   : > { %3645 = sst [smem:[#allocation38_spill]] %s2385_s27  ;;  %s3756_s12 = smov (%p56_p0, %s54_s12), 0 }
  0x28   : > { %3646 = sst [smem:[#allocation39_spill]] %s2389_s28  ;;  %p2544_p4 = por %p3573_p2, %p70_p1 }
  0x29   : > { %3647 = sst [smem:[#allocation40_spill]] %s3756_s12  ;;  %p3588_p5 = scmp.eq.s32.totalorder %s2527_s29, 0 }
  0x2a   : > { %s60_s15 = ssub.s32 %s2385_s27, %s3756_s12  ;;  %s3571_s16 = sshll.u32 %s2385_s27, 1 }
  0x2b   : > { %p61_p6 = scmp.eq.s32.totalorder %s60_s15, 0  ;;  %p2557_p7 = por %p3588_p5, %p76_p3 }
  0x2c   : > { %s1664_s11 = sadd.s32 4294967295, %s3571_s16  ;;  %s3572_s9 = sshll.u32 %s3756_s12, 1 }
  0x2d   : > { %s3649_s30 = scalar_select %p2557_p7, 1, 0 }
  0x2e   : > { %s2565_s26 = scalar_select %p61_p6, %s2377_s25, %s63_s13  }
  0x2f   : > { %3650 = sst [smem:[#allocation41_spill]] %s3649_s30  ;;  %p89_p8 = scmp.gt.s32.totalorder %s1664_s11, 0 }
  0x30   : > { %3651 = sst [smem:[#allocation42_spill]] %s2565_s26  ;;  %s1666_s15 = sadd.s32 4294967295, %s3572_s9 }
  0x31   : > { %p94_p9 = scmp.gt.s32.totalorder %s1666_s15, 0  ;;  %s99_s10 = sadd.s32 1, %s2365_s22 }
  0x32   : > { %s3758_s11 = smov (!%p89_p8, %s1664_s11), 0  ;;  %p106_p10 = scmp.ne.s32.totalorder %s2365_s22, %s2361_s21 }
  0x33   : > { %s3760_s15 = smov (!%p94_p9, %s1666_s15), 0  ;;  %p112_p11 = scmp.ne.s32.totalorder %s2361_s21, %s2357_s20 }
  0x34   : > { %s96_s13 = ssub.s32 %s3758_s11, %s3760_s15  ;;  %p430_p12 = scmp.eq.s32.totalorder %s2527_s29, 1 }
  0x35   : > { %p97_p13 = scmp.eq.s32.totalorder %s96_s13, 0  ;;  %p2577_p0 = por %p106_p10, %p3573_p2 }
  0x36   : > { %p2583_p6 = por %p112_p11, %p3588_p5  ;;  %p2590_p8 = por %p430_p12, %p70_p1 }
  0x37   : > { %s2595_s20 = scalar_select %p97_p13, %s2365_s22, %s99_s10  }
  0x38   : > { %s3653_s9 = scalar_select %p2583_p6, 1, 0 }
  0x39   : > { %s3655_s26 = scalar_select %p2590_p8, 1, 0 }
  0x3a   : > { %3654 = sst [smem:[#allocation43_spill]] %s3653_s9  ;;  %s3658_s15 = sadd.s32 4294967294, %s2389_s28  }
  0x3b   : > { %3656 = sst [smem:[#allocation44_spill]] %s3655_s26  ;;  %p436_p9 = scmp.eq.s32.totalorder %s3658_s15, 1 }
  0x3c   : > { %3657 = sst [smem:[#allocation45_spill]] %s2595_s20  ;;  %p3587_p2 = scmp.lt.s32.totalorder %s2389_s28, 2 }
  0x3d   : > { %s2602_s13 = sand.u32 1, %s2389_s28   ;;  %p2607_p11 = por %p436_p9, %p76_p3 }
  0x3e   : > { %p2615_p1 = pnand %p3587_p2, %p2544_p4  ;;  %s480_s10 = sand.u32 1, %s2365_s22  }
  0x3f   : > { %s3659_s9 = scalar_select %p2607_p11, 1, 0 }
  0x40   : > { %s3661_s26 = scalar_select %p2615_p1, 1, 0 }
  0x41   : > { %3660 = sst [smem:[#allocation46_spill]] %s3659_s9  ;;  %s2620_s20 = sshll.u32 %s480_s10, 3 }
  0x42   : > { %3662 = sst [smem:[#allocation47_spill]] %s3661_s26  ;;  %s2622_s15 = sshll.u32 %s3758_s11, 7 }
  0x43   : > { %s3663_s1 = sld [smem:[#allocation52_spill]]  ;;  %s482_s14 = scalar_lea.vmem [#allocation5], %s2620_s20 }
  0x44   : > { %s494_s9 = sshll.u32 %s482_s14, 4  ;;  %p2637_p3 = pnand %p3587_p2, %p2577_p0  ;;  %s2631_s9 = int_to_ptr.vmem [resolvable:$true] %s494_s9 }
  0x45   : > { %s2644_s11 = sand.u32 1, %s2377_s25  }
  0x46   : > { %s3664_s10 = scalar_select %p2637_p3, 1, 0 }
  0x47   : > { %p2651_p9 = pneg %p2637_p3 }
  0x49   : > { %s2628_s30 = scalar_lea.hbm %s3663_s1, %s2622_s15  ;;  %s1928_s24 = scalar_lea.hbm %s3663_s1, 512 }
  0x4a   : > { %s1923_s23 = scalar_lea.hbm %s2628_s30, 128  ;;  %p1929_p2 = scmp.lt.u32.totalorder %s2628_s30, %s3663_s1 }
  0x4b   : > { %p1924_p13 = scmp.ne.s32.totalorder %s2628_s30, %s1923_s23  ;;  %p1930_p5 = scmp.lt.u32.totalorder %s1928_s24, %s1923_s23 }
  0x4c   : > { %s3665_s14 = scalar_select %p2651_p9, 1, 0 }
  0x4d   : > { %p1926_p10 = pnand %p2651_p9, %p1924_p13  ;;  %p1931_p4 = por %p1930_p5, %p1929_p2 }
  0x4e   : > { %p1932_p12 = scmp.lt.u32.totalorder %s1923_s23, %s2628_s30 }
  0x4f   : > { %p1927_p0 = pneg %p1926_p10 }
  0x50   : > { %p1933_p11 = por %p1932_p12, %p1931_p4 }
  0x52   : > { %p1934_p8 = pnand %p1933_p11, %p1927_p0 }
  0x54   : > { %1937 = shalt.err (!%p1934_p8)
}
  0x55   : > { %s1938_s21 = scalar_lea.vmem %s2631_s9, 128  ;;  %s2391_s22 = smov [#allocation5]  }
  0x56   : > { %p1939_p10 = scmp.ne.s32.totalorder %s2631_s9, %s1938_s21  ;;  %s1943_s16 = sshll.u32 %s2391_s22, 4  ;;  %s1944_s16 = int_to_ptr.vmem [resolvable:$false] %s1943_s16 }
  0x57   : > { %s1945_s6 = scalar_lea.vmem %s1944_s16, 256  ;;  %p1946_p7 = scmp.lt.s32.totalorder %s2631_s9, %s1944_s16 }
  0x58   : > { %p1941_p13 = pnand %p1939_p10, %p2651_p9  ;;  %p1947_p1 = scmp.lt.s32.totalorder %s1945_s6, %s1938_s21 }
  0x5a   : > { %p1942_p6 = pneg %p1941_p13  ;;  %p1948_p2 = por %p1947_p1, %p1946_p7 }
  0x5c   : > { %p1949_p5 = pnand %p1948_p2, %p1942_p6 }
  0x5e   : > { %1952 = shalt.err (!%p1949_p5)
}
  0x5f   : > { %s3666_s8 = scalar_lea.sflag [#allocation6], %s2602_s13  ;;  %p3667_p8 = scmp.lt.s32.totalorder %s2389_s28, 3 }
  0x60   : > { %1792 = dma.hbm_to_vmem [thread:$0]  (!%p2637_p3), %s2628_s30, 128, %s2631_s9, %s3666_s8  }
  0x61   : > { %p3668_p11 = scmp.ge.s32.totalorder %s2389_s28, 1  ;;  %s2685_s21 = sshll.u32 %s2644_s11, 4 }
  0x62   : > { %s2688_s23 = sshll.u32 %s2385_s27, 8  ;;  %s3671_s3 = sld [smem:[#allocation54_spill]] }
  0x63   : > { %p2680_p4 = pnand %p3668_p11, %p3667_p8  ;;  %s528_s9 = scalar_lea.vmem [#allocation8], %s2685_s21 }
  0x64   : > { %s536_s30 = sshll.u32 %s528_s9, 4  ;;  %p3672_p6 = scmp.ne.s32.totalorder %s3661_s26, 0  ;;  %s2697_s30 = int_to_ptr.vmem [resolvable:$true] %s536_s30 }
  0x65   : > { %s3669_s24 = scalar_select %p2680_p4, 1, 0 }
  0x66   : > { %p2704_p1 = pneg %p3672_p6 }
  0x67   : > { %3670 = sst [smem:[#allocation48_spill]] %s3669_s24 }
  0x68   : > { %s2694_s6 = scalar_lea.hbm %s3671_s3, %s2688_s23  ;;  %s1958_s24 = scalar_lea.hbm %s3671_s3, 512 }
  0x69   : > { %s1953_s1 = scalar_lea.hbm %s2694_s6, 256  ;;  %p1959_p10 = scmp.lt.u32.totalorder %s2694_s6, %s3671_s3 }
  0x6a   : > { %p1954_p7 = scmp.ne.s32.totalorder %s2694_s6, %s1953_s1  ;;  %p1960_p13 = scmp.lt.u32.totalorder %s1958_s24, %s1953_s1 }
  0x6b   : > { %s3673_s25 = scalar_select %p2704_p1, 1, 0 }
  0x6c   : > { %p1956_p12 = pnand %p2704_p1, %p1954_p7  ;;  %p1961_p2 = por %p1960_p13, %p1959_p10 }
  0x6d   : > { %p1962_p5 = scmp.lt.u32.totalorder %s1953_s1, %s2694_s6 }
  0x6e   : > { %p1957_p0 = pneg %p1956_p12 }
  0x6f   : > { %p1963_p8 = por %p1962_p5, %p1961_p2 }
  0x71   : > { %p1964_p11 = pnand %p1963_p8, %p1957_p0 }
  0x73   : > { %1967 = shalt.err (!%p1964_p11)
}
  0x74   : > { %s1968_s8 = scalar_lea.vmem %s2697_s30, 256  ;;  %s2392_s22 = smov [#allocation8]  }
  0x75   : > { %p1969_p7 = scmp.ne.s32.totalorder %s2697_s30, %s1968_s8  ;;  %s1973_s16 = sshll.u32 %s2392_s22, 4  ;;  %s1974_s16 = int_to_ptr.vmem [resolvable:$false] %s1973_s16 }
  0x76   : > { %s1975_s4 = scalar_lea.vmem %s1974_s16, 512  ;;  %p1976_p3 = scmp.lt.s32.totalorder %s2697_s30, %s1974_s16 }
  0x77   : > { %p1971_p12 = pnand %p1969_p7, %p2704_p1  ;;  %p1977_p9 = scmp.lt.s32.totalorder %s1975_s4, %s1968_s8 }
  0x79   : > { %p1972_p4 = pneg %p1971_p12  ;;  %p1978_p10 = por %p1977_p9, %p1976_p3 }
  0x7b   : > { %p1979_p13 = pnand %p1978_p10, %p1972_p4 }
  0x7d   : > { %1982 = shalt.err (!%p1979_p13)
}
  0x7e   : > { %s3603_s1 = smov 128   ;;  %s3605_s24 = smov 8  }
  0x7f   : > { %s3674_s8 = scalar_lea.sflag [#allocation9], %s2602_s13  ;;  %s3675_s9 = sshll.u32 %s2385_s27, 1 }
  0x80   : > { %1798 = dma.hbm_to_vmem [thread:$0]  (!%p3672_p6), %s2694_s6, 256, %s2697_s30, %s3674_s8, %s3603_s1, %s3603_s1, %s3605_s24  }
  0x81   : > { %s1735_s22 = sadd.s32 2, %s3675_s9  ;;  %s3676_s16 = sshll.u32 %s3756_s12, 1 }
  0x82   : > { %s1737_s4 = sadd.s32 2, %s3676_s16  ;;  %p125_p3 = scmp.lt.s32.totalorder %s1735_s22, 3 }
  0x83   : > { %p130_p9 = scmp.lt.s32.totalorder %s1737_s4, 3  ;;  %s135_s3 = sadd.s32 1, %s2353_s19 }
  0x84   : > { %p142_p4 = scmp.ne.s32.totalorder %s2353_s19, %s2349_s18  ;;  %s3762_s22 = smov (!%p125_p3, %s1735_s22), 3 }
  0x85   : > { %s3764_s4 = smov (!%p130_p9, %s1737_s4), 3  ;;  %p3677_p0 = scmp.eq.s32.totalorder %s2389_s28, 0 }
  0x86   : > { %p148_p5 = scmp.ne.s32.totalorder %s2349_s18, %s2345_s17  ;;  %s132_s2 = ssub.s32 %s3762_s22, %s3764_s4 }
  0x87   : > { %p144_p2 = por %p142_p4, %p3677_p0  ;;  %s503_s26 = sand.u32 1, %s2353_s19  }
  0x88   : > { %p133_p8 = scmp.eq.s32.totalorder %s132_s2, 0  ;;  %p3678_p11 = scmp.eq.s32.totalorder %s2527_s29, 0 }
  0x89   : > { %s2750_s30 = sshll.u32 %s503_s26, 3  ;;  %s2752_s8 = sshll.u32 %s3762_s22, 7 }
  0x8a   : > { %p2746_p7 = por %p148_p5, %p3678_p11  ;;  %p3682_p12 = scmp.lt.s32.totalorder %s2389_s28, 2 }
  0x8b   : > { %s2755_s9 = scalar_select %p133_p8, %s2353_s19, %s135_s3  }
  0x8c   : > { %s3679_s6 = scalar_select %p2746_p7, 1, 0 }
  0x8d   : > { %3681 = sst [smem:[#allocation50_spill]] %s2755_s9  ;;  %p2759_p10 = pnand %p3682_p12, %p144_p2 }
  0x8e   : > { %3680 = sst [smem:[#allocation49_spill]] %s3679_s6  ;;  %s3684_s5 = sld [smem:[#allocation56_spill]] }
  0x8f   : > { %s3683_s16 = scalar_select %p2759_p10, 1, 0 }
  0x90   : > { %s573_s26 = scalar_lea.vmem [#allocation11], %s2750_s30  ;;  %p2777_p3 = pneg %p2759_p10 }
  0x91   : > { %s585_s22 = sshll.u32 %s573_s26, 4  ;;  %s2770_s22 = int_to_ptr.vmem [resolvable:$true] %s585_s22 }
  0x92   : > { %s3685_s24 = scalar_select %p2777_p3, 1, 0 }
  0x94   : > { %s2767_s4 = scalar_lea.hbm %s3684_s5, %s2752_s8  ;;  %s1988_s12 = scalar_lea.hbm %s3684_s5, 512 }
  0x95   : > { %s1983_s1 = scalar_lea.hbm %s2767_s4, 128  ;;  %p1989_p0 = scmp.lt.u32.totalorder %s2767_s4, %s3684_s5 }
  0x96   : > { %p1984_p13 = scmp.ne.s32.totalorder %s2767_s4, %s1983_s1  ;;  %p1990_p2 = scmp.lt.u32.totalorder %s1988_s12, %s1983_s1 }
  0x97   : > { %p1992_p8 = scmp.lt.u32.totalorder %s1983_s1, %s2767_s4 }
  0x98   : > { %p1986_p9 = pnand %p2777_p3, %p1984_p13  ;;  %p1991_p5 = por %p1990_p2, %p1989_p0 }
  0x9a   : > { %p1987_p4 = pneg %p1986_p9  ;;  %p1993_p11 = por %p1992_p8, %p1991_p5 }
  0x9c   : > { %p1994_p12 = pnand %p1993_p11, %p1987_p4 }
  0x9e   : > { %1997 = shalt.err (!%p1994_p12)
}
  0x9f   : > { %s1998_s3 = scalar_lea.vmem %s2770_s22, 128  ;;  %s2395_s17 = smov [#allocation11]  }
  0xa0   : > { %p1999_p13 = scmp.ne.s32.totalorder %s2770_s22, %s1998_s3  ;;  %s2003_s2 = sshll.u32 %s2395_s17, 4  ;;  %s2004_s2 = int_to_ptr.vmem [resolvable:$false] %s2003_s2 }
  0xa1   : > { %s2005_s27 = scalar_lea.vmem %s2004_s2, 256  ;;  %p2006_p6 = scmp.lt.s32.totalorder %s2770_s22, %s2004_s2 }
  0xa2   : > { %p2001_p9 = pnand %p1999_p13, %p2777_p3  ;;  %p2007_p1 = scmp.lt.s32.totalorder %s2005_s27, %s1998_s3 }
  0xa4   : > { %p2002_p7 = pneg %p2001_p9  ;;  %p2008_p0 = por %p2007_p1, %p2006_p6 }
  0xa6   : > { %p2009_p2 = pnand %p2008_p0, %p2002_p7 }
  0xa8   : > { %2012 = shalt.err (!%p2009_p2)
}
  0xa9   : > { %s3686_s12 = scalar_lea.sflag [#allocation12], %s2602_s13  ;;  %s3687_s7 = sld [smem:[#allocation58_spill]] }
  0xaa   : > { %1804 = dma.hbm_to_vmem [thread:$0]  (!%p2759_p10), %s2767_s4, 128, %s2770_s22, %s3686_s12  }
  0xab   : > { %s618_s3 = scalar_lea.vmem [#allocation14], %s2620_s20  ;;  %p3688_p1 = scmp.ne.s32.totalorder %s3665_s14, 0 }
  0xac   : > { %s630_s2 = sshll.u32 %s618_s3, 4  ;;  %s631_s2 = int_to_ptr.vmem [resolvable:$true] %s630_s2 }
  0xaf   : > { %s2806_s17 = scalar_lea.hbm %s3687_s7, %s2622_s15  ;;  %s2018_s22 = scalar_lea.hbm %s3687_s7, 512 }
  0xb0   : > { %s2013_s5 = scalar_lea.hbm %s2806_s17, 128  ;;  %p2019_p5 = scmp.lt.u32.totalorder %s2806_s17, %s3687_s7 }
  0xb1   : > { %p2014_p6 = scmp.ne.s32.totalorder %s2806_s17, %s2013_s5  ;;  %p2020_p8 = scmp.lt.u32.totalorder %s2018_s22, %s2013_s5 }
  0xb2   : > { %p2022_p12 = scmp.lt.u32.totalorder %s2013_s5, %s2806_s17 }
  0xb3   : > { %p2016_p7 = pnand %p2014_p6, %p3688_p1  ;;  %p2021_p11 = por %p2020_p8, %p2019_p5 }
  0xb5   : > { %p2017_p4 = pneg %p2016_p7  ;;  %p2023_p13 = por %p2022_p12, %p2021_p11 }
  0xb7   : > { %p2024_p9 = pnand %p2023_p13, %p2017_p4 }
  0xb9   : > { %2027 = shalt.err (!%p2024_p9)
}
  0xba   : > { %s2028_s26 = scalar_lea.vmem %s631_s2, 128  ;;  %s2396_s3 = smov [#allocation14]  }
  0xbb   : > { %p2029_p0 = scmp.ne.s32.totalorder %s631_s2, %s2028_s26  ;;  %s2033_s27 = sshll.u32 %s2396_s3, 4  ;;  %s2034_s27 = int_to_ptr.vmem [resolvable:$false] %s2033_s27 }
  0xbc   : > { %s2035_s9 = scalar_lea.vmem %s2034_s27, 256  ;;  %p2036_p7 = scmp.lt.s32.totalorder %s631_s2, %s2034_s27 }
  0xbd   : > { %p2031_p2 = pnand %p2029_p0, %p3688_p1  ;;  %p2037_p10 = scmp.lt.s32.totalorder %s2035_s9, %s2028_s26 }
  0xbf   : > { %p2032_p6 = pneg %p2031_p2  ;;  %p2038_p3 = por %p2037_p10, %p2036_p7 }
  0xc1   : > { %p2039_p5 = pnand %p2038_p3, %p2032_p6 }
  0xc3   : > { %2042 = shalt.err (!%p2039_p5)
}
  0xc4   : > { %p3689_p8 = scmp.ne.s32.totalorder %s3664_s10, 0  ;;  %s3690_s5 = scalar_lea.sflag [#allocation15], %s2602_s13 }
  0xc5   : > { %s3691_s0 = sld [smem:[#allocation51_spill]]  ;;  %s460_s27 = scalar_lea.vmem [#allocation2], %s2685_s21 }
  0xc6   : > { %1810 = dma.hbm_to_vmem [thread:$0]  (!%p3689_p8), %s2806_s17, 128, %s631_s2, %s3690_s5  }
  0xc7   : > { %s468_s1 = sshll.u32 %s460_s27, 4  ;;  %s457_s26 = scalar_lea.sflag [#allocation3], %s2644_s11  ;;  %s2836_s1 = int_to_ptr.vmem [resolvable:$true] %s468_s1 }
  0xc8   : > { %p3692_p3 = scmp.ne.s32.totalorder %s3673_s25, 0 }
  0xcb   : > { %s2833_s12 = scalar_lea.hbm %s3691_s0, %s2688_s23  ;;  %s2048_s9 = scalar_lea.hbm %s3691_s0, 512 }
  0xcc   : > { %s2043_s3 = scalar_lea.hbm %s2833_s12, 256  ;;  %p2049_p12 = scmp.lt.u32.totalorder %s2833_s12, %s3691_s0 }
  0xcd   : > { %p2044_p10 = scmp.ne.s32.totalorder %s2833_s12, %s2043_s3  ;;  %p2050_p13 = scmp.lt.u32.totalorder %s2048_s9, %s2043_s3 }
  0xce   : > { %p2052_p0 = scmp.lt.u32.totalorder %s2043_s3, %s2833_s12 }
  0xcf   : > { %p2046_p4 = pnand %p2044_p10, %p3692_p3  ;;  %p2051_p9 = por %p2050_p13, %p2049_p12 }
  0xd1   : > { %p2047_p11 = pneg %p2046_p4  ;;  %p2053_p2 = por %p2052_p0, %p2051_p9 }
  0xd3   : > { %p2054_p6 = pnand %p2053_p2, %p2047_p11 }
  0xd5   : > { %2057 = shalt.err (!%p2054_p6)
}
  0xd6   : > { %s2058_s22 = scalar_lea.vmem %s2836_s1, 256  ;;  %s2397_s27 = smov [#allocation2]  }
  0xd7   : > { %p2059_p7 = scmp.ne.s32.totalorder %s2836_s1, %s2058_s22  ;;  %s2063_s17 = sshll.u32 %s2397_s27, 4  ;;  %s2064_s17 = int_to_ptr.vmem [resolvable:$false] %s2063_s17 }
  0xd8   : > { %s2065_s2 = scalar_lea.vmem %s2064_s17, 512  ;;  %p2066_p4 = scmp.lt.s32.totalorder %s2836_s1, %s2064_s17 }
  0xd9   : > { %p2061_p5 = pnand %p2059_p7, %p3692_p3  ;;  %p2067_p8 = scmp.lt.s32.totalorder %s2065_s2, %s2058_s22 }
  0xdb   : > { %p2062_p10 = pneg %p2061_p5  ;;  %p2068_p12 = por %p2067_p8, %p2066_p4 }
  0xdd   : > { %p2069_p13 = pnand %p2068_p12, %p2062_p10 }
  0xdf   : > { %2072 = shalt.err (!%p2069_p13)
}
  0xe0   : > { %s3693_s3 = sld [smem:[#allocation47_spill]]  ;;  %s3695_s9 = smov 8  }
  0xe1   : > { %s3696_s5 = smov 128   ;;  %s3697_s17 = sld [smem:[#allocation53_spill]] }
  0xe2   : > { %s505_s2 = scalar_lea.vmem [#allocation7], %s2750_s30  ;;  %p3699_p9 = scmp.ne.s32.totalorder %s3685_s24, 0 }
  0xe3   : > { %s517_s7 = sshll.u32 %s505_s2, 4  ;;  %s518_s7 = int_to_ptr.vmem [resolvable:$true] %s517_s7 }
  0xe6   : > { %p3694_p11 = scmp.ne.s32.totalorder %s3693_s3, 0 }
  0xe7   : > { %s3698_s0 = smov %s3697_s17  ;;  %s2869_s22 = scalar_lea.hbm %s3697_s17, %s2752_s8 }
  0xe8   : > { %1789 = dma.hbm_to_vmem [thread:$0]  (!%p3694_p11), %s2833_s12, 256, %s2836_s1, %s457_s26, %s3696_s5, %s3696_s5, %s3695_s9  }
  0xe9   : > { %s2073_s19 = scalar_lea.hbm %s2869_s22, 128  ;;  %s2078_s12 = scalar_lea.hbm %s3698_s0, 512 }
  0xea   : > { %p2074_p8 = scmp.ne.s32.totalorder %s2869_s22, %s2073_s19  ;;  %p2079_p6 = scmp.lt.u32.totalorder %s2869_s22, %s3698_s0 }
  0xeb   : > { %p2080_p7 = scmp.lt.u32.totalorder %s2078_s12, %s2073_s19  ;;  %p2082_p10 = scmp.lt.u32.totalorder %s2073_s19, %s2869_s22 }
  0xec   : > { %p2076_p0 = pnand %p2074_p8, %p3699_p9 }
  0xed   : > { %p2081_p5 = por %p2080_p7, %p2079_p6 }
  0xee   : > { %p2077_p2 = pneg %p2076_p0 }
  0xef   : > { %p2083_p4 = por %p2082_p10, %p2081_p5 }
  0xf1   : > { %p2084_p12 = pnand %p2083_p4, %p2077_p2 }
  0xf3   : > { %2087 = shalt.err (!%p2084_p12)
}
  0xf4   : > { %s2088_s4 = scalar_lea.vmem %s518_s7, 128  ;;  %s2398_s27 = smov [#allocation7]  }
  0xf5   : > { %p2089_p13 = scmp.ne.s32.totalorder %s518_s7, %s2088_s4  ;;  %s2093_s17 = sshll.u32 %s2398_s27, 4  ;;  %s2094_s17 = int_to_ptr.vmem [resolvable:$false] %s2093_s17 }
  0xf6   : > { %s2095_s28 = scalar_lea.vmem %s2094_s17, 256  ;;  %p2096_p11 = scmp.lt.s32.totalorder %s518_s7, %s2094_s17 }
  0xf7   : > { %p2091_p8 = pnand %p2089_p13, %p3699_p9  ;;  %p2097_p3 = scmp.lt.s32.totalorder %s2095_s28, %s2088_s4 }
  0xf9   : > { %p2092_p0 = pneg %p2091_p8  ;;  %p2098_p1 = por %p2097_p3, %p2096_p11 }
  0xfb   : > { %p2099_p6 = pnand %p2098_p1, %p2092_p0 }
  0xfd   : > { %2102 = shalt.err (!%p2099_p6)
}
  0xfe   : > { %p3700_p7 = scmp.ne.s32.totalorder %s3683_s16, 0  ;;  %s3701_s19 = scalar_lea.sflag [#allocation6], %s2602_s13 }
  0xff   : > { %s3702_s12 = sld [smem:[#allocation55_spill]]  ;;  %s550_s26 = scalar_lea.vmem [#allocation10], %s2620_s20 }
 0x100   : > { %1795 = dma.hbm_to_vmem [thread:$0]  (!%p3700_p7), %s2869_s22, 128, %s518_s7, %s3701_s19  }
 0x101   : > { %s562_s4 = sshll.u32 %s550_s26, 4  ;;  %p3703_p3 = scmp.ne.s32.totalorder %s3665_s14, 0  ;;  %s563_s4 = int_to_ptr.vmem [resolvable:$true] %s562_s4 }
 0x105   : > { %s2895_s1 = scalar_lea.hbm %s3702_s12, %s2622_s15  ;;  %s2108_s7 = scalar_lea.hbm %s3702_s12, 512 }
 0x106   : > { %s2103_s27 = scalar_lea.hbm %s2895_s1, 128  ;;  %p2109_p5 = scmp.lt.u32.totalorder %s2895_s1, %s3702_s12 }
 0x107   : > { %p2104_p1 = scmp.ne.s32.totalorder %s2895_s1, %s2103_s27  ;;  %p2110_p10 = scmp.lt.u32.totalorder %s2108_s7, %s2103_s27 }
 0x108   : > { %p2112_p12 = scmp.lt.u32.totalorder %s2103_s27, %s2895_s1 }
 0x109   : > { %p2106_p11 = pnand %p2104_p1, %p3703_p3  ;;  %p2111_p4 = por %p2110_p10, %p2109_p5 }
 0x10b   : > { %p2107_p2 = pneg %p2106_p11  ;;  %p2113_p13 = por %p2112_p12, %p2111_p4 }
 0x10d   : > { %p2114_p8 = pnand %p2113_p13, %p2107_p2 }
 0x10f   : > { %2117 = shalt.err (!%p2114_p8)
}
 0x110   : > { %s2118_s20 = scalar_lea.vmem %s563_s4, 128  ;;  %s2399_s15 = smov [#allocation10]  }
 0x111   : > { %p2119_p0 = scmp.ne.s32.totalorder %s563_s4, %s2118_s20  ;;  %s2123_s6 = sshll.u32 %s2399_s15, 4  ;;  %s2124_s6 = int_to_ptr.vmem [resolvable:$false] %s2123_s6 }
 0x112   : > { %s2125_s2 = scalar_lea.vmem %s2124_s6, 256  ;;  %p2126_p11 = scmp.lt.s32.totalorder %s563_s4, %s2124_s6 }
 0x113   : > { %p2121_p6 = pnand %p2119_p0, %p3703_p3  ;;  %p2127_p7 = scmp.lt.s32.totalorder %s2125_s2, %s2118_s20 }
 0x115   : > { %p2122_p1 = pneg %p2121_p6  ;;  %p2128_p9 = por %p2127_p7, %p2126_p11 }
 0x117   : > { %p2129_p5 = pnand %p2128_p9, %p2122_p1 }
 0x119   : > { %2132 = shalt.err (!%p2129_p5)
}
 0x11a   : > { %p3704_p10 = scmp.ne.s32.totalorder %s3664_s10, 0  ;;  %s3705_s26 = scalar_lea.sflag [#allocation9], %s2602_s13 }
 0x11b   : > { %s3706_s17 = sld [smem:[#allocation57_spill]]  ;;  %s596_s22 = scalar_lea.vmem [#allocation13], %s2685_s21 }
 0x11c   : > { %1801 = dma.hbm_to_vmem [thread:$0]  (!%p3704_p10), %s2895_s1, 128, %s563_s4, %s3705_s26  }
 0x11d   : > { %s604_s19 = sshll.u32 %s596_s22, 4  ;;  %p3708_p7 = scmp.ne.s32.totalorder %s3673_s25, 0  ;;  %s2924_s19 = int_to_ptr.vmem [resolvable:$true] %s604_s19 }
 0x121   : > { %s3707_s7 = smov %s3706_s17  ;;  %s2921_s28 = scalar_lea.hbm %s3706_s17, %s2688_s23 }
 0x122   : > { %s2133_s10 = scalar_lea.hbm %s2921_s28, 256  ;;  %s2138_s4 = scalar_lea.hbm %s3707_s7, 512 }
 0x123   : > { %p2134_p9 = scmp.ne.s32.totalorder %s2921_s28, %s2133_s10  ;;  %p2139_p4 = scmp.lt.u32.totalorder %s2921_s28, %s3707_s7 }
 0x124   : > { %p2140_p12 = scmp.lt.u32.totalorder %s2138_s4, %s2133_s10  ;;  %p2142_p8 = scmp.lt.u32.totalorder %s2133_s10, %s2921_s28 }
 0x125   : > { %p2136_p3 = pnand %p2134_p9, %p3708_p7 }
 0x126   : > { %p2141_p13 = por %p2140_p12, %p2139_p4 }
 0x127   : > { %p2137_p2 = pneg %p2136_p3 }
 0x128   : > { %p2143_p0 = por %p2142_p8, %p2141_p13 }
 0x12a   : > { %p2144_p6 = pnand %p2143_p0, %p2137_p2 }
 0x12c   : > { %2147 = shalt.err (!%p2144_p6)
}
 0x12d   : > { %s2148_s2 = scalar_lea.vmem %s2924_s19, 256  ;;  %s2400_s26 = smov [#allocation13]  }
 0x12e   : > { %p2149_p1 = scmp.ne.s32.totalorder %s2924_s19, %s2148_s2  ;;  %s2153_s14 = sshll.u32 %s2400_s26, 4  ;;  %s2154_s14 = int_to_ptr.vmem [resolvable:$false] %s2153_s14 }
 0x12f   : > { %s2155_s27 = scalar_lea.vmem %s2154_s14, 512  ;;  %p2156_p10 = scmp.lt.s32.totalorder %s2924_s19, %s2154_s14 }
 0x130   : > { %p2151_p11 = pnand %p2149_p1, %p3708_p7  ;;  %p2157_p9 = scmp.lt.s32.totalorder %s2155_s27, %s2148_s2 }
 0x132   : > { %p2152_p5 = pneg %p2151_p11  ;;  %p2158_p3 = por %p2157_p9, %p2156_p10 }
 0x134   : > { %p2159_p4 = pnand %p2158_p3, %p2152_p5 }
 0x136   : > { %2162 = shalt.err (!%p2159_p4)
}
 0x137   : > { %p3709_p2 = scmp.ne.s32.totalorder %s3693_s3, 0  ;;  %s3710_s17 = scalar_lea.sflag [#allocation12], %s2602_s13 }
 0x138   : > { %s3711_s20 = sld [smem:[#allocation59_spill]]  ;;  %s641_s15 = scalar_lea.vmem [#allocation16], %s2750_s30 }
 0x139   : > { %1807 = dma.hbm_to_vmem [thread:$0]  (!%p3709_p2), %s2921_s28, 256, %s2924_s19, %s3710_s17, %s3696_s5, %s3696_s5, %s3695_s9  }
 0x13a   : > { %s653_s6 = sshll.u32 %s641_s15, 4  ;;  %p3713_p13 = scmp.ne.s32.totalorder %s3685_s24, 0  ;;  %s654_s6 = int_to_ptr.vmem [resolvable:$true] %s653_s6 }
 0x13e   : > { %s3712_s1 = smov %s3711_s20  ;;  %s2956_s4 = scalar_lea.hbm %s3711_s20, %s2752_s8 }
 0x13f   : > { %s2163_s2 = scalar_lea.hbm %s2956_s4, 128  ;;  %s2168_s28 = scalar_lea.hbm %s3712_s1, 512 }
 0x140   : > { %p2164_p12 = scmp.ne.s32.totalorder %s2956_s4, %s2163_s2  ;;  %p2169_p6 = scmp.lt.u32.totalorder %s2956_s4, %s3712_s1 }
 0x141   : > { %p2170_p1 = scmp.lt.u32.totalorder %s2168_s28, %s2163_s2  ;;  %p2172_p5 = scmp.lt.u32.totalorder %s2163_s2, %s2956_s4 }
 0x142   : > { %p2166_p8 = pnand %p2164_p12, %p3713_p13 }
 0x143   : > { %p2171_p11 = por %p2170_p1, %p2169_p6 }
 0x144   : > { %p2167_p0 = pneg %p2166_p8 }
 0x145   : > { %p2173_p10 = por %p2172_p5, %p2171_p11 }
 0x147   : > { %p2174_p9 = pnand %p2173_p10, %p2167_p0 }
 0x149   : > { %2177 = shalt.err (!%p2174_p9)
}
 0x14a   : > { %s2178_s30 = scalar_lea.vmem %s654_s6, 128  ;;  %s2401_s8 = smov [#allocation16]  }
 0x14b   : > { %p2179_p3 = scmp.ne.s32.totalorder %s654_s6, %s2178_s30  ;;  %s2183_s17 = sshll.u32 %s2401_s8, 4  ;;  %s2184_s17 = int_to_ptr.vmem [resolvable:$false] %s2183_s17 }
 0x14c   : > { %s2185_s22 = scalar_lea.vmem %s2184_s17, 256  ;;  %p2186_p8 = scmp.lt.s32.totalorder %s654_s6, %s2184_s17 }
 0x14d   : > { %p2181_p4 = pnand %p2179_p3, %p3713_p13  ;;  %p2187_p2 = scmp.lt.s32.totalorder %s2185_s22, %s2178_s30 }
 0x14f   : > { %p2182_p12 = pneg %p2181_p4  ;;  %p2188_p7 = por %p2187_p2, %p2186_p8 }
 0x151   : > { %p2189_p1 = pnand %p2188_p7, %p2182_p12 }
 0x153   : > { %2192 = shalt.err (!%p2189_p1)
}
 0x154   : > { %p3714_p6 = scmp.ne.s32.totalorder %s3683_s16, 0  ;;  %s3715_s10 = scalar_lea.sflag [#allocation15], %s2602_s13 }
 0x155   : > { %s3716_s15 = sld [smem:[#allocation61_spill]]  ;;  %s675_s26 = scalar_lea.vmem [#allocation17], %s2685_s21 }
 0x156   : > { %1813 = dma.hbm_to_vmem [thread:$0]  (!%p3714_p6), %s2956_s4, 128, %s654_s6, %s3715_s10  }
 0x157   : > { %s683_s14 = sshll.u32 %s675_s26, 4  ;;  %s672_s13 = scalar_lea.sflag [#allocation18], %s2644_s11  ;;  %s2985_s14 = int_to_ptr.vmem [resolvable:$true] %s683_s14 }
 0x158   : > { %p3717_p2 = scmp.ne.s32.totalorder %s3673_s25, 0 }
 0x15b   : > { %s2982_s2 = scalar_lea.hbm %s3716_s15, %s2688_s23  ;;  %s2198_s28 = scalar_lea.hbm %s3716_s15, 512 }
 0x15c   : > { %s2193_s16 = scalar_lea.hbm %s2982_s2, 256  ;;  %p2199_p11 = scmp.lt.u32.totalorder %s2982_s2, %s3716_s15 }
 0x15d   : > { %p2194_p7 = scmp.ne.s32.totalorder %s2982_s2, %s2193_s16  ;;  %p2200_p5 = scmp.lt.u32.totalorder %s2198_s28, %s2193_s16 }
 0x15e   : > { %p2202_p9 = scmp.lt.u32.totalorder %s2193_s16, %s2982_s2 }
 0x15f   : > { %p2196_p13 = pnand %p2194_p7, %p3717_p2  ;;  %p2201_p10 = por %p2200_p5, %p2199_p11 }
 0x161   : > { %p2197_p0 = pneg %p2196_p13  ;;  %p2203_p3 = por %p2202_p9, %p2201_p10 }
 0x163   : > { %p2204_p4 = pnand %p2203_p3, %p2197_p0 }
 0x165   : > { %2207 = shalt.err (!%p2204_p4)
}
 0x166   : > { %s2208_s21 = scalar_lea.vmem %s2985_s14, 256  ;;  %s2402_s27 = smov [#allocation17]  }
 0x167   : > { %p2209_p12 = scmp.ne.s32.totalorder %s2985_s14, %s2208_s21  ;;  %s2213_s30 = sshll.u32 %s2402_s27, 4  ;;  %s2214_s30 = int_to_ptr.vmem [resolvable:$false] %s2213_s30 }
 0x168   : > { %s2215_s8 = scalar_lea.vmem %s2214_s30, 512  ;;  %p2216_p6 = scmp.lt.s32.totalorder %s2985_s14, %s2214_s30 }
 0x169   : > { %p2211_p8 = pnand %p2209_p12, %p3717_p2  ;;  %p2217_p7 = scmp.lt.s32.totalorder %s2215_s8, %s2208_s21 }
 0x16b   : > { %p2212_p1 = pneg %p2211_p8  ;;  %p2218_p13 = por %p2217_p7, %p2216_p6 }
 0x16d   : > { %p2219_p11 = pnand %p2218_p13, %p2212_p1 }
 0x16f   : > { %2222 = shalt.err (!%p2219_p11)
}
 0x170   : > { %p3718_p0 = scmp.ne.s32.totalorder %s3693_s3, 0  ;;  %s3719_s25 = sld [smem:[#allocation48_spill]] }
 0x172   : > { %1816 = dma.hbm_to_vmem [thread:$0]  (!%p3718_p0), %s2982_s2, 256, %s2985_s14, %s672_s13, %s3696_s5, %s3696_s5, %s3695_s9  }
 0x176   : > { %p3720_p2 = scmp.ne.s32.totalorder %s3719_s25, 0 }
 0x177   : > { %s3721_s17 = sld [smem:[#allocation35_spill]] (!%p3720_p2)  ;;  %s3722_s22 = sld [smem:[#allocation41_spill]] (!%p3720_p2) }
 0x178   : > { %695 = sbr.rel (%p3720_p2) target bundleno = 827 (0x33b), region = 64 }
 0x17d   : > { %s3017_s10 = sand.u32 (!%p3720_p2), 1, %s3721_s17   ;;  %p3723_p5 = scmp.ne.s32.totalorder (!%p3720_p2), %s3722_s22, 0 }
 0x17e   : > { %s3020_s24 = sshll.u32 (!%p3720_p2), %s3017_s10, 4  ;;  %s698_s3 = scalar_lea.sflag (!%p3720_p2), [#allocation3], %s3017_s10 }
 0x17f   : > { %s701_s20 = scalar_lea.vmem [#allocation2], %s3020_s24 }
 0x180   : > { %2300 = dma.done.wait (%p3723_p5), %s698_s3, 256  }
 0x181   : > { %2302 = vsyncadd (%p3723_p5), %s698_s3, 4294967040  ;;  %s3724_s11 = sld [smem:[#allocation32_spill]]  ;;  %s3725_s9 = sld [smem:[#allocation43_spill]] }
 0x182   : > { %s706_s5 = sand.u32 1, %s2527_s29  }
 0x183   : > { %s707_s14 = scalar_lea.sflag [#allocation6], %s706_s5 }
 0x187   : > { %s708_s2 = sand.u32 1, %s3724_s11   ;;  %p3726_p10 = scmp.ne.s32.totalorder %s3725_s9, 0 }
 0x188   : > { %s3030_s26 = sshll.u32 %s708_s2, 3 }
 0x189   : > { %s710_s13 = scalar_lea.vmem [#allocation5], %s3030_s26 }
 0x18a   : > { %2304 = dma.done.wait (%p3726_p10), %s707_s14, 128  }
 0x18b   : > { %2306 = vsyncadd (%p3726_p10), %s707_s14, 4294967168  ;;  %s3727_s16 = sld [smem:[#allocation49_spill]]  ;;  %s717_s4 = sand.u32 1, %s2349_s18  }
 0x18c   : > { %s3038_s6 = sshll.u32 %s717_s4, 3 }
 0x18d   : > { %s719_s28 = scalar_lea.vmem [#allocation7], %s3038_s6 }
 0x191   : > { %p3728_p9 = scmp.ne.s32.totalorder %s3727_s16, 0 }
 0x193   : > { %2308 = dma.done.wait (%p3728_p9), %s707_s14, 128  }
 0x194   : > { %2310 = vsyncadd (%p3728_p9), %s707_s14, 4294967168  ;;  %s725_s29 = scalar_lea.sflag [#allocation9], %s706_s5  ;;  %s728_s23 = scalar_lea.vmem [#allocation8], %s3020_s24 }
 0x195   : > { %2312 = dma.done.wait (%p3723_p5), %s725_s29, 256  }
 0x196   : > { %2314 = vsyncadd (%p3723_p5), %s725_s29, 4294967040  ;;  %s737_s19 = scalar_lea.vmem [#allocation10], %s3030_s26 }
 0x197   : > { %2316 = dma.done.wait (%p3726_p10), %s725_s29, 128  }
 0x198   : > { %2318 = vsyncadd (%p3726_p10), %s725_s29, 4294967168  ;;  %s743_s21 = scalar_lea.sflag [#allocation12], %s706_s5  ;;  %s746_s27 = scalar_lea.vmem [#allocation11], %s3038_s6 }
 0x199   : > { %2320 = dma.done.wait (%p3728_p9), %s743_s21, 128  }
 0x19a   : > { %2322 = vsyncadd (%p3728_p9), %s743_s21, 4294967168  ;;  %s755_s30 = scalar_lea.vmem [#allocation13], %s3020_s24 }
 0x19b   : > { %2324 = dma.done.wait (%p3723_p5), %s743_s21, 256  }
 0x19c   : > { %2326 = vsyncadd (%p3723_p5), %s743_s21, 4294967040  ;;  %s761_s8 = scalar_lea.sflag [#allocation15], %s706_s5  ;;  %s764_s25 = scalar_lea.vmem [#allocation14], %s3030_s26 }
 0x19d   : > { %2328 = dma.done.wait (%p3726_p10), %s761_s8, 128  }
 0x19e   : > { %2330 = vsyncadd (%p3726_p10), %s761_s8, 4294967168  ;;  %s773_s17 = scalar_lea.vmem [#allocation16], %s3038_s6 }
 0x19f   : > { %2332 = dma.done.wait (%p3728_p9), %s761_s8, 128  }
 0x1a0   : > { %2334 = vsyncadd (%p3728_p9), %s761_s8, 4294967168  ;;  %s779_s3 = scalar_lea.sflag [#allocation18], %s3017_s10  ;;  %s782_s11 = scalar_lea.vmem [#allocation17], %s3020_s24 }
 0x1a1   : > { %2336 = dma.done.wait (%p3723_p5), %s779_s3, 256  }
 0x1a2   : > { %2338 = vsyncadd (%p3723_p5), %s779_s3, 4294967040  ;;  %v3083_v0 = vld [vmem:[%s701_s20] sm:$0xff]  ;;  %s2403_s9 = smov 127   ;;  %s2404_s5 = smov 1   ;;  %v3091_v1 = vld [vmem:[%s701_s20 + $0x8] sm:$0xff]  ;;  %v918_v33 = vlaneseq }
 0x1a3   : > { %999 = vrot.lane.b32.xlu1 %v3083_v0, %s2403_s9  ;;  %991 = vrot.lane.b32.xlu0 %v3083_v0, %s2404_s5  ;;  %v3099_v2 = vld [vmem:[%s728_s23 + $0x8] sm:$0xff]  ;;  %v3103_v3 = vld [vmem:[%s728_s23] sm:$0xff]  ;;  %s3729_s22 = sld [smem:[#allocation37_spill]]  ;;  %s1727_s6 = sshll.u32 %s3017_s10, 3 }
 0x1a4   : > { %v3115_v4 = vld [vmem:[%s710_s13] sm:$0xff]  ;;  %v3127_v6 = vld [vmem:[%s719_s28] sm:$0xff]  ;;  %v943_v12 = vmax.f32 %v3083_v0, %v3103_v3  ;;  %v944_v13 = vmax.f32 %v3091_v1, %v3099_v2  ;;  %s3730_s13 = sld [smem:[#allocation60_spill]]  ;;  %v3195_v34 = vand.u32 127, %v918_v33  ;;  %v3203_v39 = vshrl.u32 %v918_v33, 7  ;;  %s3731_s23 = sld [smem:[#allocation44_spill]] }
 0x1a5   : > { %v3123_v5 = vld [vmem:[%s737_s19] sm:$0xff]  ;;  %v3135_v7 = vld [vmem:[%s746_s27] sm:$0xff]  ;;  %s871_s21 = scalar_lea.vmem [#allocation19], %s1727_s6 }
 0x1a6   : > { %v3143_v8 = vld [vmem:[%s755_s30 + $0x8] sm:$0xff]  ;;  %v3147_v9 = vld [vmem:[%s755_s30] sm:$0xff]  ;;  %vm935_vm0 = vcmp.eq.s32.totalorder %v3195_v34, 0  ;;  %vm936_vm1 = vcmp.eq.s32.totalorder %v3195_v34, 127  ;;  %vm1039_vm2 = vcmp.lt.s32.totalorder %v3203_v39, 1  ;;  %vm1072_vm3 = vcmp.lt.s32.totalorder %v3203_v39, 7 }
 0x1a7   : > { %1001 = vrot.lane.b32.xlu1 %v3091_v1, %s2403_s9  ;;  %993 = vrot.lane.b32.xlu0 %v3091_v1, %s2404_s5  ;;  %v3159_v10 = vld [vmem:[%s764_s25] sm:$0xff]  ;;  %v3167_v11 = vld [vmem:[%s773_s17] sm:$0xff]  ;;  %v945_v14 = vsub.f32 %v3147_v9, %v943_v12  ;;  %v946_v15 = vsub.f32 %v3143_v8, %v944_v13  ;;  %vm921_vm4 = vcmp.eq.s32.totalorder %v3203_v39, 0  ;;  %vm1343_vm6 = vcmp.eq.s32.totalorder %v3203_v39, 1  ;;  %s1371_s27 = sshll.u32 %s871_s21, 4  ;;  %s3732_s25 = sld [smem:[#allocation62_spill]]  ;;  %s3491_s27 = int_to_ptr.vmem [resolvable:$true] %s1371_s27 }
 0x1a8   : > { %v975_v16 = vld [vmem:[%s782_s11] sm:$0xff]  ;;  %v976_v17 = vld [vmem:[%s782_s11 + $0x8] sm:$0xff]  ;;  %vm1347_vm7 = vcmp.eq.s32.totalorder %v3203_v39, 2  ;;  %vm1351_vm8 = vcmp.eq.s32.totalorder %v3203_v39, 3  ;;  %s1357_s11 = scalar_lea.sflag [#allocation4], %s3017_s10 }
 0x1a9   : > { %s1728_s20 = sshll.u32 %s3729_s22, 1  ;;  %v947_v20 = vand.u32 2147483647, %v945_v14  ;;  %v948_v21 = vand.u32 2147483647, %v946_v15  ;;  %v977_v22 = vsub.f32 %v3103_v3, %v975_v16  ;;  %v978_v23 = vsub.f32 %v3099_v2, %v976_v17  ;;  %s1731_s19 = sshll.u32 %s3729_s22, 7 }
 0x1aa   : > { %p910_p3 = scmp.lt.s32.totalorder %s1728_s20, 3  ;;  %p3734_p12 = scmp.ne.s32.totalorder %s3731_s23, 0 }
 0x1ab   : > { %1119 = vrot.lane.b32.xlu1 %v3099_v2, %s2404_s5  ;;  %1117 = vrot.lane.b32.xlu0 %v3103_v3, %s2404_s5  ;;  %v949_v26 = vadd.f32 %v948_v21, %v947_v20  ;;  %v979_v27 = vand.u32 2147483647, %v977_v22  ;;  %v980_v28 = vand.u32 2147483647, %v978_v23  ;;  %v3242_v23 = vadd.s32 8, %v3203_v39 }
 0x1ac   : > { %s3766_s20 = smov (!%p910_p3, %s1728_s20), 3 }
 0x1ad   : > { %s1729_s2 = sshll.u32 %s3766_s20, 3  ;;  %v981_v31 = vadd.f32 %v980_v28, %v979_v27  ;;  %vm924_vm5 = vcmp.eq.s32.totalorder %v3242_v23, 15  ;;  %s3733_s3 = smov %s3732_s25 }
 0x1ae   : > { %s913_s16 = scalar_lea.vmem %s3730_s13, %s1729_s2  ;;  %s3489_s17 = scalar_lea.hbm %s3732_s25, %s1731_s19 }
 0x1af   : > { %1125 = vrot.lane.b32.xlu1 %v3099_v2, %s2403_s9  ;;  %1123 = vrot.lane.b32.xlu0 %v3103_v3, %s2403_s9  ;;  %v959_v18 = vld [vmem:[%s913_s16] sm:$0xff]  ;;  %v960_v19 = vld [vmem:[%s913_s16 + $0x8] sm:$0xff] }
 0x1b0   : > { %v961_v24 = vsub.f32 %v3083_v0, %v959_v18  ;;  %v962_v25 = vsub.f32 %v3091_v1, %v960_v19 }
 0x1b2   : > { %v963_v29 = vand.u32 2147483647, %v961_v24  ;;  %v964_v30 = vand.u32 2147483647, %v962_v25  ;;  %v3245_v24 = vsub.s32 0, %v3203_v39 }
 0x1b3   : > { %1019 = vrot.lane.b32.xlu1 %v3115_v4, %s2403_s9  ;;  %1016 = vrot.lane.b32.xlu0 %v3115_v4, %s2404_s5 }
 0x1b4   : > { %v965_v32 = vadd.f32 %v964_v30, %v963_v29 }
 0x1b7   : > { %1138 = vrot.lane.b32.xlu1 %v3123_v5, %s2404_s5  ;;  %1027 = vrot.lane.b32.xlu0 %v3127_v6, %s2404_s5 }
 0x1bb   : > { %1149 = vrot.lane.b32.xlu1 %v3135_v7, %s2404_s5  ;;  %1141 = vrot.lane.b32.xlu0 %v3123_v5, %s2403_s9 }
 0x1bf   : > { %1225 = vrot.lane.b32.xlu1 %v3143_v8, %s2404_s5  ;;  %1223 = vrot.lane.b32.xlu0 %v3147_v9, %s2404_s5 }
 0x1c3   : > { %1231 = vrot.lane.b32.xlu1 %v3143_v8, %s2403_s9  ;;  %1229 = vrot.lane.b32.xlu0 %v3147_v9, %s2403_s9 }
 0x1c7   : > { %1247 = vrot.lane.b32.xlu1 %v3159_v10, %s2403_s9  ;;  %1244 = vrot.lane.b32.xlu0 %v3159_v10, %s2404_s5 }
 0x1cb   : > { %1030 = vrot.lane.b32.xlu1 %v3127_v6, %s2403_s9  ;;  %1255 = vrot.lane.b32.xlu0 %v3167_v11, %s2404_s5  ;;  %s2405_s5 = smov [#allocation19]  }
 0x1cc   : > { %s2227_s22 = sshll.u32 %s2405_s5, 4  ;;  %s2228_s22 = int_to_ptr.vmem [resolvable:$false] %s2227_s22 }
 0x1cd   : > { %s2229_s20 = scalar_lea.vmem %s2228_s22, 256  ;;  %p2230_p6 = scmp.lt.s32.totalorder %s3491_s27, %s2228_s22 }
 0x1cf   : > { %1258 = vrot.lane.b32.xlu1 %v3167_v11, %s2403_s9  ;;  %1152 = vrot.lane.b32.xlu0 %v3135_v7, %s2403_s9  ;;  %s2223_s9 = scalar_lea.vmem %s3491_s27, 128 }
 0x1d0   : > { %p2224_p4 = scmp.ne.s32.totalorder %s3491_s27, %s2223_s9  ;;  %p2231_p7 = scmp.lt.s32.totalorder %s2229_s20, %s2223_s9 }
 0x1d2   : > { %p2225_p8 = pnand %p2224_p4, %p3734_p12  ;;  %p2232_p13 = por %p2231_p7, %p2230_p6 }
 0x1d4   : > { %p2226_p1 = pneg %p2225_p8 }
 0x1d6   : > { %p2233_p11 = pnand %p2232_p13, %p2226_p1 }
 0x1ee   : > { %950 = vadd.xlane.f32.xlu0 %v949_v26 }
 0x1f2   : > { %982 = vadd.xlane.f32.xlu0 %v981_v31 }
 0x1f3   : > { %966 = vadd.xlane.f32.xlu1 %v965_v32 }
 0x215   : > { %v1000_v35 = vpop.permute.xlu1 %999  ;;  %v992_v36 = vpop.permute.xlu0 %991 }
 0x216   : > { %v997_v37 = vsel %vm935_vm0, 0.0, %v992_v36  ;;  %v1005_v38 = vsel %vm936_vm1, 0.0, %v1000_v35 }
 0x217   : > { %v1009_v40 = vadd.f32 %v997_v37, %v3083_v0  ;;  %v3206_v43 = vsub.f32 %v1005_v38, %v997_v37 }
 0x219   : > { %v1002_v41 = vpop.permute.xlu1 %1001  ;;  %v994_v42 = vpop.permute.xlu0 %993  ;;  %v1011_v48 = vadd.f32 %v1009_v40, %v3083_v0  ;;  %v1037_v53 = vrot.slane %v3206_v43, 7  ;;  %v1070_v14 = vrot.slane %v3206_v43, 1 }
 0x21a   : > { %v1006_v44 = vsel %vm936_vm1, 0.0, %v1002_v41  ;;  %v998_v45 = vsel %vm935_vm0, 0.0, %v994_v42 }
 0x21b   : > { %v1008_v46 = vsub.f32 %v1006_v44, %v998_v45  ;;  %v1010_v47 = vadd.f32 %v998_v45, %v3091_v1  ;;  %v1013_v59 = vadd.f32 %v1011_v48, %v1005_v38 }
 0x21d   : > { %v1012_v49 = vadd.f32 %v1010_v47, %v3091_v1  ;;  %v1038_v50 = vrot.slane %v1008_v46, 7  ;;  %v1120_v51 = vpop.permute.xlu1 %1119  ;;  %v1118_v52 = vpop.permute.xlu0 %1117  ;;  %v1071_v1 = vrot.slane %v1008_v46, 1  ;;  %v1058_v19 = vrot.slane %v1013_v59, 7 }
 0x21e   : > { %v1122_v54 = vsel %vm935_vm0, 0.0, %v1120_v51  ;;  %v1121_v55 = vsel %vm935_vm0, 0.0, %v1118_v52  ;;  %v1091_v25 = vrot.slane %v1013_v59, 1 }
 0x21f   : > { %v1132_v56 = vadd.f32 %v1122_v54, %v3099_v2  ;;  %v1131_v57 = vadd.f32 %v1121_v55, %v3103_v3  ;;  %v1040_v58 = vsel %vm1039_vm2, %v1037_v53, %v1038_v50  ;;  %v1014_v60 = vadd.f32 %v1012_v49, %v1006_v44 }
 0x220   : > { %v1104_v15 = vadd.f32 %v1040_v58, %v1008_v46  ;;  %v1041_v27 = vsel %vm1039_vm2, %v1038_v50, %v1037_v53  ;;  %v3251_v28 = vsel %vm1072_vm3, %v1071_v1, %v1070_v14  ;;  %v1073_v32 = vsel %vm1072_vm3, %v1070_v14, %v1071_v1 }
 0x221   : > { %v1134_v61 = vadd.f32 %v1132_v56, %v3099_v2  ;;  %v1126_v62 = vpop.permute.xlu1 %1125  ;;  %v1133_v63 = vadd.f32 %v1131_v57, %v3103_v3  ;;  %v1124_v0 = vpop.permute.xlu0 %1123  ;;  %v3235_v2 = vsub.s32 7, %v3203_v39  ;;  %v1059_v20 = vrot.slane %v1014_v60, 7 }
 0x222   : > { %v1128_v12 = vsel %vm936_vm1, 0.0, %v1126_v62  ;;  %v1127_v13 = vsel %vm936_vm1, 0.0, %v1124_v0  ;;  %v1092_v26 = vrot.slane %v1014_v60, 1  ;;  %v3253_v29 = vadd.f32 %v1104_v15, %v1008_v46 }
 0x223   : > { %v3237_v16 = vsub.f32 %v1128_v12, %v1122_v54  ;;  %v1136_v3 = vadd.f32 %v1134_v61, %v1128_v12  ;;  %v3239_v17 = vsub.f32 %v1127_v13, %v1121_v55  ;;  %v1135_v18 = vadd.f32 %v1133_v63, %v1127_v13 }
 0x224   : > { %v1061_v38 = vsel %vm1039_vm2, %v1059_v20, %v1058_v19  ;;  %v3268_v45 = vsel %vm1039_vm2, %v1058_v19, %v1059_v20  ;;  %v3274_v49 = vsel %vm1072_vm3, %v1092_v26, %v1091_v25  ;;  %v3281_v53 = vsel %vm1072_vm3, %v1091_v25, %v1092_v26 }
 0x225   : > { %v1020_v21 = vpop.permute.xlu1 %1019  ;;  %v1017_v22 = vpop.permute.xlu0 %1016  ;;  %v1160_v33 = vrot.slane %v3237_v16, 7  ;;  %v1172_v35 = vrot.slane %v1136_v3, 7  ;;  %v1159_v36 = vrot.slane %v3239_v17, 7  ;;  %v1171_v37 = vrot.slane %v1135_v18, 7 }
 0x226   : > { %v1021_v30 = vsel %vm936_vm1, 0.0, %v1020_v21  ;;  %v1018_v31 = vsel %vm935_vm0, 0.0, %v1017_v22  ;;  %v1196_v46 = vrot.slane %v1136_v3, 1  ;;  %v1195_v47 = vrot.slane %v1135_v18, 1 }
 0x227   : > { %v1022_v40 = vsub.f32 %v1021_v30, %v1018_v31  ;;  %v1023_v41 = vadd.f32 %v1018_v31, %v3115_v4  ;;  %v1184_v54 = vrot.slane %v3237_v16, 1  ;;  %v1161_v55 = vsel %vm1039_vm2, %v1159_v36, %v1160_v33 }
 0x228   : > { %v3288_v56 = vsel %vm1039_vm2, %v1171_v37, %v1172_v35  ;;  %v1183_v57 = vrot.slane %v3239_v17, 1  ;;  %v1197_v63 = vsel %vm1072_vm3, %v1195_v47, %v1196_v46  ;;  %v3300_v0 = vsel %vm1072_vm3, %v1196_v46, %v1195_v47 }
 0x229   : > { %v1139_v42 = vpop.permute.xlu1 %1138  ;;  %v1028_v44 = vpop.permute.xlu0 %1027  ;;  %v1024_v50 = vadd.f32 %v1023_v41, %v3115_v4  ;;  %v1049_v51 = vrot.slane %v1022_v40, %v3235_v2  ;;  %v1174_v4 = vsel %vm1039_vm2, %v1172_v35, %v1171_v37  ;;  %v1162_v3 = vsel %vm1039_vm2, %v1160_v33, %v1159_v36 }
 0x22a   : > { %v1140_v48 = vsel %vm935_vm0, 0.0, %v1139_v42  ;;  %v3316_v19 = vsel %vm1072_vm3, %v1184_v54, %v1183_v57  ;;  %v1208_v20 = vadd.f32 %v1161_v55, %v3237_v16 }
 0x22b   : > { %v1145_v52 = vadd.f32 %v1140_v48, %v3123_v5  ;;  %v1025_v58 = vadd.f32 %v1024_v50, %v1021_v30  ;;  %v1050_v59 = vsel %vm921_vm4, %v1049_v51, %v1041_v27 }
 0x22c   : > { %v1056_v1 = vsel %vm921_vm4, 0.0, %v1050_v59 }
 0x22d   : > { %v1150_v60 = vpop.permute.xlu1 %1149  ;;  %v1146_v61 = vadd.f32 %v1145_v52, %v3123_v5  ;;  %v1142_v62 = vpop.permute.xlu0 %1141  ;;  %v1065_v13 = vrot.slane %v1025_v58, %v3235_v2  ;;  %v1103_v14 = vadd.f32 %v1056_v1, %v3206_v43  ;;  %v3310_v5 = vsel %vm935_vm0, 0.0, %v1028_v44 }
 0x22e   : > { %v1143_v12 = vsel %vm936_vm1, 0.0, %v1142_v62  ;;  %v3324_v25 = vsel %vm935_vm0, 0.0, %v1150_v60  ;;  %v1034_v31 = vadd.f32 %v3310_v5, %v3127_v6 }
 0x22f   : > { %v1144_v15 = vsub.f32 %v1143_v12, %v1140_v48  ;;  %v1147_v18 = vadd.f32 %v1146_v61, %v1143_v12  ;;  %v1066_v21 = vsel %vm921_vm4, %v1065_v13, %v1061_v38  ;;  %v1105_v22 = vadd.f32 %v1103_v14, %v3206_v43 }
 0x230   : > { %v1068_v40 = vsel %vm921_vm4, 0.0, %v1066_v21  ;;  %v1156_v41 = vadd.f32 %v3324_v25, %v3135_v7  ;;  %v1035_v12 = vadd.f32 %v1034_v31, %v3127_v6  ;;  %v1185_v13 = vsel %vm1072_vm3, %v1183_v57, %v1184_v54 }
 0x231   : > { %v1166_v26 = vrot.slane %v1144_v15, %v3235_v2  ;;  %v1226_v27 = vpop.permute.xlu1 %1225  ;;  %v1224_v30 = vpop.permute.xlu0 %1223  ;;  %v1178_v33 = vrot.slane %v1147_v18, %v3235_v2  ;;  %v3346_v46 = vadd.f32 %v1105_v22, %v1073_v32  ;;  %v3358_v32 = vadd.f32 %v1208_v20, %v3237_v16 }
 0x232   : > { %v1228_v35 = vsel %vm935_vm0, 0.0, %v1226_v27  ;;  %v1227_v36 = vsel %vm935_vm0, 0.0, %v1224_v30 }
 0x233   : > { %v1167_v43 = vsel %vm921_vm4, %v1166_v26, %v1162_v3  ;;  %v1238_v37 = vadd.f32 %v1228_v35, %v3143_v8  ;;  %v1237_v38 = vadd.f32 %v1227_v36, %v3147_v9  ;;  %v1179_v44 = vsel %vm921_vm4, %v1178_v33, %v1174_v4 }
 0x234   : > { %v1169_v42 = vsel %vm921_vm4, 0.0, %v1167_v43  ;;  %v1181_v47 = vsel %vm921_vm4, 0.0, %v1179_v44  ;;  %v1109_v4 = vsub.f32 %v1068_v40, %v3281_v53  ;;  %v1111_v3 = vand.u32 2147483647, %v3346_v46 }
 0x235   : > { %v1207_v48 = vadd.f32 %v1169_v42, %v3239_v17  ;;  %v1240_v50 = vadd.f32 %v1238_v37, %v3143_v8  ;;  %v1232_v51 = vpop.permute.xlu1 %1231  ;;  %v1239_v52 = vadd.f32 %v1237_v38, %v3147_v9  ;;  %v1230_v55 = vpop.permute.xlu0 %1229  ;;  %v1213_v60 = vsub.f32 %v1181_v47, %v1197_v63 }
 0x236   : > { %v1234_v58 = vsel %vm936_vm1, 0.0, %v1232_v51  ;;  %v1233_v59 = vsel %vm936_vm1, 0.0, %v1230_v55  ;;  %v1157_v63 = vadd.f32 %v1156_v41, %v3135_v7  ;;  %v3378_v57 = vand.u32 2147483647, %v1109_v4 }
 0x237   : > { %v3361_v61 = vsub.f32 %v1234_v58, %v1228_v35  ;;  %v1242_v62 = vadd.f32 %v1240_v50, %v1234_v58  ;;  %v3363_v8 = vsub.f32 %v1233_v59, %v1227_v36  ;;  %v1209_v9 = vadd.f32 %v1207_v48, %v3239_v17 }
 0x238   : > { %v1241_v1 = vadd.f32 %v1239_v52, %v1233_v59  ;;  %v3380_v22 = vand.u32 2147483647, %v1213_v60  ;;  %v1115_v23 = vadd.f32 %v3378_v57, %v1111_v3 }
 0x239   : > { %v1278_v16 = vrot.slane %v1242_v62, 7  ;;  %v1302_v14 = vrot.slane %v1242_v62, 1  ;;  %v1248_v15 = vpop.permute.xlu1 %1247  ;;  %v1245_v53 = vpop.permute.xlu0 %1244  ;;  %v1266_v18 = vrot.slane %v3361_v61, 7  ;;  %v1265_v17 = vrot.slane %v3363_v8, 7 }
 0x23a   : > { %v1277_v20 = vrot.slane %v1241_v1, 7  ;;  %v1301_v21 = vrot.slane %v1241_v1, 1  ;;  %v1249_v6 = vsel %vm936_vm1, 0.0, %v1248_v15  ;;  %v1246_v54 = vsel %vm935_vm0, 0.0, %v1245_v53 }
 0x23b   : > { %v1290_v7 = vrot.slane %v3361_v61, 1  ;;  %v1289_v27 = vrot.slane %v3363_v8, 1  ;;  %v3388_v30 = vadd.f32 %v1209_v9, %v1185_v13  ;;  %v1250_v35 = vsub.f32 %v1249_v6, %v1246_v54 }
 0x23c   : > { %v3385_v26 = vsel %vm1039_vm2, %v1277_v20, %v1278_v16  ;;  %v1280_v31 = vsel %vm1039_vm2, %v1278_v16, %v1277_v20  ;;  %v3394_v33 = vsel %vm1072_vm3, %v1301_v21, %v1302_v14  ;;  %v1251_v36 = vadd.f32 %v1246_v54, %v3159_v10 }
 0x23d   : > { %v1031_v43 = vpop.permute.xlu1 %1030  ;;  %v1256_v37 = vpop.permute.xlu0 %1255  ;;  %v1304_v38 = vsel %vm1072_vm3, %v1302_v14, %v1301_v21  ;;  %v1268_v40 = vsel %vm1039_vm2, %v1266_v18, %v1265_v17  ;;  %v1272_v47 = vrot.slane %v1250_v35, %v3235_v2  ;;  %v1292_v52 = vsel %vm1072_vm3, %v1290_v7, %v1289_v27 }
 0x23e   : > { %v1032_v41 = vsel %vm936_vm1, 0.0, %v1031_v43  ;;  %v1257_v42 = vsel %vm935_vm0, 0.0, %v1256_v37  ;;  %v1252_v44 = vadd.f32 %v1251_v36, %v3159_v10  ;;  %v1215_v55 = vand.u32 2147483647, %v3388_v30 }
 0x23f   : > { %v1033_v48 = vsub.f32 %v1032_v41, %v3310_v5  ;;  %v1036_v50 = vadd.f32 %v1035_v12, %v1032_v41  ;;  %v1262_v51 = vadd.f32 %v1257_v42, %v3167_v11  ;;  %v1267_v58 = vsel %vm1039_vm2, %v1265_v17, %v1266_v18 }
 0x240   : > { %v1253_v59 = vadd.f32 %v1252_v44, %v1249_v6  ;;  %v1273_v4 = vsel %vm921_vm4, %v1272_v47, %v1268_v40  ;;  %v1314_v6 = vadd.f32 %v1267_v58, %v3361_v61 }
 0x241   : > { %v1082_v10 = vrot.slane %v1033_v48, %v3245_v24  ;;  %v1098_v60 = vrot.slane %v1036_v50, %v3245_v24  ;;  %v1259_v5 = vpop.permute.xlu1 %1258  ;;  %v1153_v62 = vpop.permute.xlu0 %1152  ;;  %v1275_v9 = vsel %vm921_vm4, 0.0, %v1273_v4  ;;  %v1263_v12 = vadd.f32 %v1262_v51, %v3167_v11 }
 0x242   : > { %v1260_v1 = vsel %vm936_vm1, 0.0, %v1259_v5  ;;  %v1154_v13 = vsel %vm936_vm1, 0.0, %v1153_v62  ;;  %v1284_v16 = vrot.slane %v1253_v59, %v3235_v2  ;;  %v1313_v14 = vadd.f32 %v1275_v9, %v3363_v8 }
 0x243   : > { %v1084_v15 = vsel %vm924_vm5, %v1082_v10, %v3251_v28  ;;  %v1100_v53 = vsel %vm924_vm5, %v1098_v60, %v3274_v49  ;;  %v1261_v34 = vsub.f32 %v1260_v1, %v1257_v42  ;;  %v1264_v17 = vadd.f32 %v1263_v12, %v1260_v1 }
 0x244   : > { %v1090_v18 = vsel %vm924_vm5, 0.0, %v1084_v15  ;;  %v1102_v11 = vsel %vm924_vm5, 0.0, %v1100_v53  ;;  %v1155_v20 = vsub.f32 %v1154_v13, %v3324_v25  ;;  %v1158_v21 = vadd.f32 %v1157_v63, %v1154_v13 }
 0x245   : > { %v1108_v2 = vadd.f32 %v3253_v29, %v1090_v18  ;;  %v1110_v28 = vsub.f32 %v3268_v45, %v1102_v11  ;;  %v1296_v54 = vrot.slane %v1261_v34, %v3245_v24  ;;  %v1308_v49 = vrot.slane %v1264_v17, %v3245_v24 }
 0x246   : > { %v1285_v30 = vsel %vm921_vm4, %v1284_v16, %v1280_v31  ;;  %v1190_v35 = vrot.slane %v1155_v20, %v3245_v24  ;;  %v1202_v36 = vrot.slane %v1158_v21, %v3245_v24  ;;  %v1291_v29 = vsel %vm1072_vm3, %v1289_v27, %v1290_v7 }
 0x247   : > { %v1112_v43 = vand.u32 2147483647, %v1108_v2  ;;  %v1298_v25 = vsel %vm924_vm5, %v1296_v54, %v1292_v52  ;;  %v1310_v45 = vsel %vm924_vm5, %v1308_v49, %v1304_v38  ;;  %v1287_v63 = vsel %vm921_vm4, 0.0, %v1285_v30 }
 0x248   : > { %v1315_v37 = vadd.f32 %v1313_v14, %v3363_v8  ;;  %v1300_v31 = vsel %vm924_vm5, 0.0, %v1298_v25  ;;  %v1312_v24 = vsel %vm924_vm5, 0.0, %v1310_v45  ;;  %v1192_v7 = vsel %vm924_vm5, %v1190_v35, %v3316_v19 }
 0x249   : > { %v1204_v27 = vsel %vm924_vm5, %v1202_v36, %v3300_v0  ;;  %v1194_v38 = vsel %vm924_vm5, 0.0, %v1192_v7  ;;  %v1114_v40 = vand.u32 2147483647, %v1110_v28  ;;  %v1316_v41 = vadd.f32 %v1314_v6, %v3361_v61 }
 0x24a   : > { %v1206_v8 = vsel %vm924_vm5, 0.0, %v1204_v27  ;;  %v1212_v42 = vadd.f32 %v3358_v32, %v1194_v38  ;;  %v1317_v47 = vadd.f32 %v1315_v37, %v1291_v29  ;;  %v1319_v19 = vsub.f32 %v1287_v63, %v3394_v33 }
 0x24b   : > { %v1214_v44 = vsub.f32 %v3288_v56, %v1206_v8  ;;  %v1219_v48 = vadd.f32 %v3380_v22, %v1215_v55  ;;  %v1318_v50 = vadd.f32 %v1316_v41, %v1300_v31  ;;  %v1320_v0 = vsub.f32 %v3385_v26, %v1312_v24 }
 0x24c   : > { %v1216_v51 = vand.u32 2147483647, %v1212_v42  ;;  %v1321_v58 = vand.u32 2147483647, %v1317_v47  ;;  %v1323_v59 = vand.u32 2147483647, %v1319_v19  ;;  %v1116_v4 = vadd.f32 %v1114_v40, %v1112_v43 }
 0x24d   : > { %v1218_v52 = vand.u32 2147483647, %v1214_v44  ;;  %v1322_v61 = vand.u32 2147483647, %v1318_v50  ;;  %v1324_v32 = vand.u32 2147483647, %v1320_v0  ;;  %v1221_v10 = vmax.f32 %v1115_v23, %v1219_v48 }
 0x24e   : > { %v1325_v60 = vadd.f32 %v1323_v59, %v1321_v58 }
 0x24f   : > { %v1220_v56 = vadd.f32 %v1218_v52, %v1216_v51  ;;  %v1326_v5 = vadd.f32 %v1324_v32, %v1322_v61 }
 0x250   : > { %v1327_v22 = vsub.f32 %v1325_v60, %v1221_v10 }
 0x251   : > { %v1222_v33 = vmax.f32 %v1116_v4, %v1220_v56 }
 0x252   : > { %v1329_v62 = vand.u32 2147483647, %v1327_v22 }
 0x253   : > { %v1328_v55 = vsub.f32 %v1326_v5, %v1222_v33 }
 0x255   : > { %v1330_v26 = vand.u32 2147483647, %v1328_v55 }
 0x257   : > { %v1331_v9 = vadd.f32 %v1330_v26, %v1329_v62 }
 0x259   : > { %1332 = vadd.xlane.f32.xlu0 %v1331_v9 }
 0x27b   : > { %v951_v1 = vpop.xlane.xlu0 %950 }
 0x27c   : > { %v952_v12 = vrot.slane %v951_v1, 4 }
 0x27e   : > { %v953_v46 = vadd.f32 %v952_v12, %v951_v1 }
 0x27f   : > { %v983_v13 = vpop.xlane.xlu0 %982 }
 0x280   : > { %v954_v3 = vrot.slane %v953_v46, 2  ;;  %v967_v57 = vpop.xlane.xlu1 %966  ;;  %v984_v16 = vrot.slane %v983_v13, 4 }
 0x281   : > { %v968_v14 = vrot.slane %v967_v57, 4 }
 0x282   : > { %v985_v15 = vadd.f32 %v984_v16, %v983_v13  ;;  %v955_v53 = vadd.f32 %v954_v3, %v953_v46 }
 0x283   : > { %v969_v18 = vadd.f32 %v968_v14, %v967_v57 }
 0x284   : > { %v986_v11 = vrot.slane %v985_v15, 2  ;;  %v956_v34 = vrot.slane %v955_v53, 1 }
 0x285   : > { %v970_v17 = vrot.slane %v969_v18, 2 }
 0x286   : > { %v957_v2 = vadd.f32 %v956_v34, %v955_v53  ;;  %v987_v20 = vadd.f32 %v986_v11, %v985_v15 }
 0x287   : > { %v971_v21 = vadd.f32 %v970_v17, %v969_v18 }
 0x288   : > { %1756 = vpush %v957_v2  ;;  %v988_v6 = vrot.slane %v987_v20, 1 }
 0x289   : > { %v972_v28 = vrot.slane %v971_v21, 1 }
 0x28a   : > { %v989_v54 = vadd.f32 %v988_v6, %v987_v20 }
 0x28b   : > { %v973_v49 = vadd.f32 %v972_v28, %v971_v21 }
 0x28d   : > { %1758 = vpush %v973_v49 }
 0x28e   : > { %1760 = vpush %v989_v54 }
 0x2b9   : > { %s1757_s24 = spop %1756 }
 0x2ba   : > { %v1344_v63 = vstv %s1757_s24 }
 0x2bb   : > { %v1345_v24 = vsel %vm1343_vm6, %v1344_v63, 0.0 }
 0x2be   : > { %s1759_s4 = spop %1758 }
 0x2bf   : > { %s1761_s28 = spop %1760  ;;  %v1348_v37 = vstv %s1759_s4 }
 0x2c0   : > { %v1352_v27 = vstv %s1761_s28  ;;  %v1349_v8 = vsel %vm1347_vm7, %v1348_v37, 0.0 }
 0x2c1   : > { %v1353_v41 = vsel %vm1351_vm8, %v1352_v27, 0.0 }
 0x2e6   : > { %v1333_v30 = vpop.xlane.xlu0 %1332 }
 0x2e7   : > { %v1334_v35 = vrot.slane %v1333_v30, 4 }
 0x2e9   : > { %v1335_v36 = vadd.f32 %v1334_v35, %v1333_v30 }
 0x2eb   : > { %v1336_v43 = vrot.slane %v1335_v36, 2 }
 0x2ed   : > { %v1337_v29 = vadd.f32 %v1336_v43, %v1335_v36 }
 0x2ef   : > { %v1338_v25 = vrot.slane %v1337_v29, 1 }
 0x2f1   : > { %v1339_v45 = vadd.f32 %v1338_v25, %v1337_v29 }
 0x2f3   : > { %1762 = vpush %v1339_v45 }
 0x324   : > { %s1763_s29 = spop %1762 }
 0x325   : > { %v1341_v31 = vstv %s1763_s29 }
 0x326   : > { %v1342_v7 = vsel %vm921_vm4, %v1341_v31, 0.0 }
 0x327   : > { %v1346_v38 = vadd.f32 %v1345_v24, %v1342_v7 }
 0x329   : > { %v1350_v40 = vadd.f32 %v1349_v8, %v1346_v38 }
 0x32b   : > { %v1354_v42 = vadd.f32 %v1353_v41, %v1350_v40 }
 0x32d   : > { %1355 = vst [vmem:[%s871_s21] sm:$0xff] %v1354_v42 }
 0x32e   : > { %2236 = shalt.err (!%p2233_p11)
}
 0x32f   : > { %s2237_s10 = scalar_lea.hbm %s3489_s17, 128  ;;  %s2241_s14 = scalar_lea.hbm %s3733_s3, 256 }
 0x330   : > { %p2238_p0 = scmp.ne.s32.totalorder %s3489_s17, %s2237_s10  ;;  %p2242_p10 = scmp.lt.u32.totalorder %s3489_s17, %s3733_s3 }
 0x331   : > { %p2243_p9 = scmp.lt.u32.totalorder %s2241_s14, %s2237_s10  ;;  %p2245_p4 = scmp.lt.u32.totalorder %s2237_s10, %s3489_s17 }
 0x332   : > { %p2239_p2 = pnand %p2238_p0, %p3734_p12 }
 0x333   : > { %p2244_p3 = por %p2243_p9, %p2242_p10 }
 0x334   : > { %p2240_p5 = pneg %p2239_p2 }
 0x335   : > { %p2246_p8 = por %p2245_p4, %p2244_p3 }
 0x337   : > { %p2247_p1 = pnand %p2246_p8, %p2240_p5 }
 0x339   : > { %2250 = shalt.err (!%p2247_p1)
}
 0x33a   : > { %1784 = dma.vmem_to_hbm [thread:$0]  (%p3734_p12), %s3491_s27, 128, %s3489_s17, %s1357_s11  }
 0x33b PF: > { %s3735_s24 = sld [smem:[#allocation34_spill]]  ;;  %s3736_s4 = sld [smem:[#allocation46_spill]] }
 0x33c   : > { %s3737_s6 = sld [smem:[#allocation39_spill]] }
 0x341   : > { %s1383_s28 = sand.u32 1, %s3735_s24   ;;  %p3738_p6 = scmp.ne.s32.totalorder %s3736_s4, 0 }
 0x342   : > { %p3739_p7 = scmp.ge.s32.totalorder %s3737_s6, 2  ;;  %s1384_s29 = scalar_lea.sflag [#allocation4], %s1383_s28 }
 0x344   : > { %p1818_p13 = pnand %p3739_p7, %p3738_p6 }
 0x346   : > { %2340 = dma.done.wait (!%p1818_p13), %s1384_s29, 128  }
 0x347   : > { %2342 = vsyncadd (!%p1818_p13), %s1384_s29, 4294967168  ;;  %s42_s28 = sadd.s32 1, %s3737_s6   ;;  %s3740_s19 = sld [smem:[#allocation31_spill]] }
 0x348   : > { %p39_p11 = scmp.ge.s32.totalorder %s42_s28, 4   ;;  %s3741_s23 = sld [smem:[#allocation50_spill]] }
 0x349   : > { %s3742_s20 = sld [smem:[#allocation32_spill]]  ;;  %s3743_s21 = sld [smem:[#allocation33_spill]] }
 0x34a   : > { %s3744_s22 = sld [smem:[#allocation45_spill]]  ;;  %s3745_s27 = sld [smem:[#allocation35_spill]] }
 0x34b   : > { %s3746_s24 = sld [smem:[#allocation36_spill]]  ;;  %s3747_s25 = sld [smem:[#allocation42_spill]] }
 0x34c   : > { %s3748_s26 = sld [smem:[#allocation38_spill]]  ;;  %s3749_s30 = sld [smem:[#allocation40_spill]] }
 0x34d   : > { %s3750_s17 = smov %s2349_s18  ;;  %s3751_s18 = smov %s3740_s19 }
 0x34e   : > { %s3752_s19 = smov %s3741_s23  ;;  %41 = sbr.rel (!%p39_p11) target bundleno = 32 (0x20), region = 221 }
 0x350   : > { %s3753_s23 = smov %s3745_s27 }
 0x352   : > { %s3754_s27 = smov %s3749_s30 }
 0x355   :  { %1389 = vsyncpa [#allocation3], 1 }
 0x356   :  { %1391 = vsyncpa [#allocation3 + $0x1], 1 }
 0x357   :  { %1392 = vsyncpa [#allocation6], 1 }
 0x358   :  { %1394 = vsyncpa [#allocation6 + $0x1], 1 }
 0x359   :  { %1395 = vsyncpa [#allocation9], 1 }
 0x35a   :  { %1397 = vsyncpa [#allocation9 + $0x1], 1 }
 0x35b   :  { %1398 = vsyncpa [#allocation12], 1 }
 0x35c   :  { %1400 = vsyncpa [#allocation12 + $0x1], 1 }
 0x35d   :  { %1401 = vsyncpa [#allocation15], 1 }
 0x35e   :  { %1403 = vsyncpa [#allocation15 + $0x1], 1 }
 0x35f   :  { %1404 = vsyncpa [#allocation18], 1 }
 0x360   :  { %1406 = vsyncpa [#allocation18 + $0x1], 1 }
 0x361   :  { %1407 = vsyncpa [#allocation4], 1 }
 0x362   :  { %1409 = vsyncpa [#allocation4 + $0x1], 1 }

</bundles_post_ra>
